<compile_context>
chip_gen: v7x
topology: tpu7x:2x2x1
jax: 0.10.0
libtpu: 0.0.40
codegen_flags: <defaults>
</compile_context>

<pallas_src>
import jax
import jax.numpy as jnp
from jax import lax
from jax.experimental import pallas as pl
from jax.experimental.pallas import tpu as pltpu


# ---------------------------------------------------------------------------
# Fused forward kernel (one grid step = one image)
# ---------------------------------------------------------------------------

def _mnist_fused_kernel(x_ref,
                        w1_ref, b1_ref, rse1_ref, rso1_ref, cse1_ref, cso1_ref,
                        w2_ref, b2_ref, rse2_ref, rso2_ref, cse2_ref, cso2_ref,
                        wfc1_ref, bfc1_ref, wfc2_ref, bfc2_ref, wfc3_ref, bfc3_ref,
                        o_ref):
    f32 = jnp.float32
    bf16 = jnp.bfloat16

    img = x_ref[0]                                                  # (28, 28) f32

    # ---- Conv2d(1, 6, 5): in-kernel im2col (25 static slices, lane concat)
    #      followed by a single bf16 matmul against a block-structured weight.
    #      Output layout: a1[y, x*6 + co]  -> (24, 144)
    p1 = jnp.concatenate(
        [img[i:i + 24, j:j + 24] for i in range(5) for j in range(5)],
        axis=1)                                                     # (24, 600)
    a1 = jnp.dot(p1.astype(bf16), w1_ref[...],
                 preferred_element_type=f32) + b1_ref[...]          # (24, 144)

    # ---- MaxPool2d(2,2) + ReLU via 0/1 selection matmuls (f32, exact).
    r1 = jnp.maximum(jnp.dot(rse1_ref[...], a1, preferred_element_type=f32),
                     jnp.dot(rso1_ref[...], a1, preferred_element_type=f32))   # (12, 144)
    h1 = jnp.maximum(jnp.dot(r1, cse1_ref[...], preferred_element_type=f32),
                     jnp.dot(r1, cso1_ref[...], preferred_element_type=f32))   # (12, 72)
    h1 = jnp.maximum(h1, 0.0)                                       # h1[y, x*6 + ci]

    # ---- Conv2d(6, 16, 5): because channels are interleaved in lanes, every
    #      5x5 patch is a contiguous (8, 48) slice of h1.
    #      Output layout: a2[y, x*16 + co] -> (8, 128)  (exactly 128 lanes).
    p2 = jnp.concatenate(
        [h1[i:i + 8, j * 6:(j + 8) * 6] for i in range(5) for j in range(5)],
        axis=1)                                                     # (8, 1200)
    a2 = jnp.dot(p2.astype(bf16), w2_ref[...],
                 preferred_element_type=f32) + b2_ref[...]          # (8, 128)

    # ---- MaxPool2d(2,2) + ReLU.
    r2 = jnp.maximum(jnp.dot(rse2_ref[...], a2, preferred_element_type=f32),
                     jnp.dot(rso2_ref[...], a2, preferred_element_type=f32))   # (4, 128)
    h2 = jnp.maximum(jnp.dot(r2, cse2_ref[...], preferred_element_type=f32),
                     jnp.dot(r2, cso2_ref[...], preferred_element_type=f32))   # (4, 64)
    h2 = jnp.maximum(h2, 0.0)                                       # h2[y, x*16 + c]

    # ---- view(-1, 16*4*4): flatten by lane concat (no reshape); the NCHW
    #      permutation is folded into wfc1 on the host.
    feat = jnp.concatenate([h2[k:k + 1, :] for k in range(4)], axis=1)   # (1, 256)

    # ---- Classifier: Linear+ReLU, Linear+ReLU, Linear, Softmax(dim=1).
    z = jnp.dot(feat.astype(bf16), wfc1_ref[...],
                preferred_element_type=f32) + bfc1_ref[...]         # (1, 120)
    z = jnp.maximum(z, 0.0)
    z = jnp.dot(z.astype(bf16), wfc2_ref[...],
                preferred_element_type=f32) + bfc2_ref[...]         # (1, 84)
    z = jnp.maximum(z, 0.0)
    logits = jnp.dot(z.astype(bf16), wfc3_ref[...],
                     preferred_element_type=f32) + bfc3_ref[...]    # (1, N)

    logits = logits - jnp.max(logits, axis=-1, keepdims=True)
    e = jnp.exp(logits)
    inv = pl.reciprocal(jnp.sum(e, axis=-1, keepdims=True), approx=True)
    o_ref[0] = e * inv


# ---------------------------------------------------------------------------
# Host-side (one-time) constant preparation: block-structured conv weights,
# pooling selection matrices, permuted FC weights, lane-tiled biases.
# ---------------------------------------------------------------------------

def prepare_constants(params):
    f32, bf16 = jnp.float32, jnp.bfloat16

    # Conv1: W1big[(t*24 + x'), (x*6 + co)] = delta(x', x) * w1[co, 0, i_t, j_t]
    w1tap = params["conv1_w"].reshape(6, 25).T.astype(f32)                    # (25, 6)
    w1big = jnp.einsum("xy,tc->txyc", jnp.eye(24, dtype=f32),
                       w1tap).reshape(600, 144).astype(bf16)
    b1 = jnp.tile(params["conv1_b"].astype(f32), 24).reshape(1, 144)

    # Pool1 selectors (even/odd rows; even/odd x keeping channel interleave).
    rse1 = (jnp.arange(24)[None, :] == 2 * jnp.arange(12)[:, None]).astype(f32)      # (12, 24)
    rso1 = (jnp.arange(24)[None, :] == 2 * jnp.arange(12)[:, None] + 1).astype(f32)
    sxe1 = (jnp.arange(24)[:, None] == 2 * jnp.arange(12)[None, :]).astype(f32)      # (24, 12)
    sxo1 = (jnp.arange(24)[:, None] == 2 * jnp.arange(12)[None, :] + 1).astype(f32)
    cse1 = jnp.kron(sxe1, jnp.eye(6, dtype=f32))                                     # (144, 72)
    cso1 = jnp.kron(sxo1, jnp.eye(6, dtype=f32))

    # Conv2: W2big[(t*48 + x'*6 + ci), (x*16 + co)] = delta(x', x) * w2[co, ci, i_t, j_t]
    w2tap = params["conv2_w"].transpose(2, 3, 1, 0).reshape(25, 6, 16).astype(f32)
    w2big = jnp.einsum("xy,tic->txiyc", jnp.eye(8, dtype=f32),
                       w2tap).reshape(1200, 128).astype(bf16)
    b2 = jnp.tile(params["conv2_b"].astype(f32), 8).reshape(1, 128)

    # Pool2 selectors.
    rse2 = (jnp.arange(8)[None, :] == 2 * jnp.arange(4)[:, None]).astype(f32)        # (4, 8)
    rso2 = (jnp.arange(8)[None, :] == 2 * jnp.arange(4)[:, None] + 1).astype(f32)
    sxe2 = (jnp.arange(8)[:, None] == 2 * jnp.arange(4)[None, :]).astype(f32)        # (8, 4)
    sxo2 = (jnp.arange(8)[:, None] == 2 * jnp.arange(4)[None, :] + 1).astype(f32)
    cse2 = jnp.kron(sxe2, jnp.eye(16, dtype=f32))                                    # (128, 64)
    cso2 = jnp.kron(sxo2, jnp.eye(16, dtype=f32))

    # FC1: fold the PyTorch NCHW flatten (c*16 + y*4 + x) -> kernel order
    # (y*64 + x*16 + c) into the weight.
    wfc1 = params["fc1_w"].reshape(120, 16, 4, 4).transpose(2, 3, 1, 0) \
                          .reshape(256, 120).astype(bf16)
    bfc1 = params["fc1_b"].astype(f32).reshape(1, 120)
    wfc2 = params["fc2_w"].T.astype(bf16)
    bfc2 = params["fc2_b"].astype(f32).reshape(1, 84)
    wfc3 = params["fc3_w"].T.astype(bf16)
    bfc3 = params["fc3_b"].astype(f32).reshape(1, -1)

    return (w1big, b1, rse1, rso1, cse1, cso1,
            w2big, b2, rse2, rso2, cse2, cso2,
            wfc1, bfc1, wfc2, bfc2, wfc3, bfc3)


def mnist_net_forward(x, consts):
    """x: (B, 1, 28, 28) f32; consts: output of prepare_constants."""
    B = x.shape[0]
    N = consts[-1].shape[1]
    x3 = x.reshape(B, 28, 28).astype(jnp.float32)

    in_specs = [pl.BlockSpec((1, 28, 28), lambda b: (b, 0, 0))]
    # All constants are small, full-array blocks with a constant index map, so
    # they stay VMEM-resident across grid steps (no per-step re-DMA).
    in_specs += [pl.BlockSpec(c.shape, lambda b: (0, 0)) for c in consts]

    out = pl.pallas_call(
        _mnist_fused_kernel,
        out_shape=jax.ShapeDtypeStruct((B, 1, N), jnp.float32),
        grid=(B,),
        in_specs=in_specs,
        out_specs=pl.BlockSpec((1, 1, N), lambda b: (b, 0, 0)),
        compiler_params=pltpu.CompilerParams(
            dimension_semantics=("parallel",),   # shards batch over v7x's 2 TCs
        ),
    )(x3, *consts)
    return out.reshape(B, N)


# ---------------------------------------------------------------------------
# Pure-JAX reference (for correctness checking) and parameter init
# ---------------------------------------------------------------------------

def mnist_ref(x, params):
    y = lax.conv_general_dilated(x, params["conv1_w"], (1, 1), "VALID",
                                 dimension_numbers=("NCHW", "OIHW", "NCHW"))
    y = y + params["conv1_b"][None, :, None, None]
    y = lax.reduce_window(y, -jnp.inf, lax.max, (1, 1, 2, 2), (1, 1, 2, 2), "VALID")
    y = jnp.maximum(y, 0.0)
    y = lax.conv_general_dilated(y, params["conv2_w"], (1, 1), "VALID",
                                 dimension_numbers=("NCHW", "OIHW", "NCHW"))
    y = y + params["conv2_b"][None, :, None, None]
    y = lax.reduce_window(y, -jnp.inf, lax.max, (1, 1, 2, 2), (1, 1, 2, 2), "VALID")
    y = jnp.maximum(y, 0.0)
    f = y.reshape(y.shape[0], -1)
    h = jnp.maximum(f @ params["fc1_w"].T + params["fc1_b"], 0.0)
    h = jnp.maximum(h @ params["fc2_w"].T + params["fc2_b"], 0.0)
    logits = h @ params["fc3_w"].T + params["fc3_b"]
    return jax.nn.softmax(logits, axis=1)


def init_params(key, N=10):
    ks = jax.random.split(key, 10)
    s = 0.1
    return {
        "conv1_w": s * jax.random.normal(ks[0], (6, 1, 5, 5), jnp.float32),
        "conv1_b": s * jax.random.normal(ks[1], (6,), jnp.float32),
        "conv2_w": s * jax.random.normal(ks[2], (16, 6, 5, 5), jnp.float32),
        "conv2_b": s * jax.random.normal(ks[3], (16,), jnp.float32),
        "fc1_w": s * jax.random.normal(ks[4], (120, 256), jnp.float32),
        "fc1_b": s * jax.random.normal(ks[5], (120,), jnp.float32),
        "fc2_w": s * jax.random.normal(ks[6], (84, 120), jnp.float32),
        "fc2_b": s * jax.random.normal(ks[7], (84,), jnp.float32),
        "fc3_w": s * jax.random.normal(ks[8], (N, 84), jnp.float32),
        "fc3_b": s * jax.random.normal(ks[9], (N,), jnp.float32),
    }


if __name__ == "__main__":
    key = jax.random.PRNGKey(0)
    k_x, k_p = jax.random.split(key)
    # MNIST-shaped input (28x28 is required by the 16*4*4 flatten), small batch.
    x = jax.random.normal(k_x, (2, 1, 28, 28), jnp.float32)
    params = init_params(k_p, N=10)

    consts = prepare_constants(params)          # one-time host-side prep
    fwd = jax.jit(mnist_net_forward)
    out = jax.block_until_ready(fwd(x, consts))

    ref = jax.block_until_ready(mnist_ref(x, params))

    assert out.shape == (2, 10), out.shape
    # Row sums ~1 (approx reciprocal in softmax -> loose tolerance).
    assert bool(jnp.all(jnp.abs(jnp.sum(out, axis=1) - 1.0) < 1e-2))
    # Matches the pure-JAX reference within bf16-matmul tolerance.
    assert bool(jnp.max(jnp.abs(out - ref)) < 5e-2), float(jnp.max(jnp.abs(out - ref)))
    print("KERNEL_OK")
</pallas_src>

<mosaic_0001>
module attributes {stable_mosaic.version = 11 : i64} {
  func.func @_mnist_fused_kernel(%arg0: i32, %arg1: memref<1x28x28xf32, #tpu.memory_space<vmem>>, %arg2: memref<600x144xbf16, #tpu.memory_space<vmem>>, %arg3: memref<1x144xf32, #tpu.memory_space<vmem>>, %arg4: memref<12x24xf32, #tpu.memory_space<vmem>>, %arg5: memref<12x24xf32, #tpu.memory_space<vmem>>, %arg6: memref<144x72xf32, #tpu.memory_space<vmem>>, %arg7: memref<144x72xf32, #tpu.memory_space<vmem>>, %arg8: memref<1200x128xbf16, #tpu.memory_space<vmem>>, %arg9: memref<1x128xf32, #tpu.memory_space<vmem>>, %arg10: memref<4x8xf32, #tpu.memory_space<vmem>>, %arg11: memref<4x8xf32, #tpu.memory_space<vmem>>, %arg12: memref<128x64xf32, #tpu.memory_space<vmem>>, %arg13: memref<128x64xf32, #tpu.memory_space<vmem>>, %arg14: memref<256x120xbf16, #tpu.memory_space<vmem>>, %arg15: memref<1x120xf32, #tpu.memory_space<vmem>>, %arg16: memref<120x84xbf16, #tpu.memory_space<vmem>>, %arg17: memref<1x84xf32, #tpu.memory_space<vmem>>, %arg18: memref<84x10xbf16, #tpu.memory_space<vmem>>, %arg19: memref<1x10xf32, #tpu.memory_space<vmem>>, %arg20: memref<1x1x10xf32, #tpu.memory_space<vmem>>) attributes {dimension_semantics = [#tpu.dimension_semantics<parallel>], iteration_bounds = array<i64: 2>, scalar_prefetch = 0 : i64, scratch_operands = 0 : i64, tpu.core_type = #tpu.core_type<tc>, window_params = [{transform_indices = @transform_0, window_bounds = array<i64: 1, 28, 28>}, {pipeline_mode = #tpu.pipeline_mode<synchronous>, transform_indices = @transform_1, window_bounds = array<i64: 600, 144>}, {pipeline_mode = #tpu.pipeline_mode<synchronous>, transform_indices = @transform_2, window_bounds = array<i64: 1, 144>}, {pipeline_mode = #tpu.pipeline_mode<synchronous>, transform_indices = @transform_3, window_bounds = array<i64: 12, 24>}, {pipeline_mode = #tpu.pipeline_mode<synchronous>, transform_indices = @transform_4, window_bounds = array<i64: 12, 24>}, {pipeline_mode = #tpu.pipeline_mode<synchronous>, transform_indices = @transform_5, window_bounds = array<i64: 144, 72>}, {pipeline_mode = #tpu.pipeline_mode<synchronous>, transform_indices = @transform_6, window_bounds = array<i64: 144, 72>}, {pipeline_mode = #tpu.pipeline_mode<synchronous>, transform_indices = @transform_7, window_bounds = array<i64: 1200, 128>}, {pipeline_mode = #tpu.pipeline_mode<synchronous>, transform_indices = @transform_8, window_bounds = array<i64: 1, 128>}, {pipeline_mode = #tpu.pipeline_mode<synchronous>, transform_indices = @transform_9, window_bounds = array<i64: 4, 8>}, {pipeline_mode = #tpu.pipeline_mode<synchronous>, transform_indices = @transform_10, window_bounds = array<i64: 4, 8>}, {pipeline_mode = #tpu.pipeline_mode<synchronous>, transform_indices = @transform_11, window_bounds = array<i64: 128, 64>}, {pipeline_mode = #tpu.pipeline_mode<synchronous>, transform_indices = @transform_12, window_bounds = array<i64: 128, 64>}, {pipeline_mode = #tpu.pipeline_mode<synchronous>, transform_indices = @transform_13, window_bounds = array<i64: 256, 120>}, {pipeline_mode = #tpu.pipeline_mode<synchronous>, transform_indices = @transform_14, window_bounds = array<i64: 1, 120>}, {pipeline_mode = #tpu.pipeline_mode<synchronous>, transform_indices = @transform_15, window_bounds = array<i64: 120, 84>}, {pipeline_mode = #tpu.pipeline_mode<synchronous>, transform_indices = @transform_16, window_bounds = array<i64: 1, 84>}, {pipeline_mode = #tpu.pipeline_mode<synchronous>, transform_indices = @transform_17, window_bounds = array<i64: 84, 10>}, {pipeline_mode = #tpu.pipeline_mode<synchronous>, transform_indices = @transform_18, window_bounds = array<i64: 1, 10>}, {transform_indices = @transform_19, window_bounds = array<i64: 1, 1, 10>}]} {
    %c0 = arith.constant 0 : index
    %c0_0 = arith.constant 0 : index
    %c0_1 = arith.constant 0 : index
    %0 = vector.load %arg1[%c0, %c0_0, %c0_1] : memref<1x28x28xf32, #tpu.memory_space<vmem>>, vector<1x28x28xf32>
    %1 = vector.shape_cast %0 : vector<1x28x28xf32> to vector<28x28xf32>
    %2 = vector.extract_strided_slice %1 {offsets = [0, 0], sizes = [24, 24], strides = [1, 1]} : vector<28x28xf32> to vector<24x24xf32>
    %3 = vector.extract_strided_slice %1 {offsets = [0, 1], sizes = [24, 24], strides = [1, 1]} : vector<28x28xf32> to vector<24x24xf32>
    %4 = vector.extract_strided_slice %1 {offsets = [0, 2], sizes = [24, 24], strides = [1, 1]} : vector<28x28xf32> to vector<24x24xf32>
    %5 = vector.extract_strided_slice %1 {offsets = [0, 3], sizes = [24, 24], strides = [1, 1]} : vector<28x28xf32> to vector<24x24xf32>
    %6 = vector.extract_strided_slice %1 {offsets = [0, 4], sizes = [24, 24], strides = [1, 1]} : vector<28x28xf32> to vector<24x24xf32>
    %7 = vector.extract_strided_slice %1 {offsets = [1, 0], sizes = [24, 24], strides = [1, 1]} : vector<28x28xf32> to vector<24x24xf32>
    %8 = vector.extract_strided_slice %1 {offsets = [1, 1], sizes = [24, 24], strides = [1, 1]} : vector<28x28xf32> to vector<24x24xf32>
    %9 = vector.extract_strided_slice %1 {offsets = [1, 2], sizes = [24, 24], strides = [1, 1]} : vector<28x28xf32> to vector<24x24xf32>
    %10 = vector.extract_strided_slice %1 {offsets = [1, 3], sizes = [24, 24], strides = [1, 1]} : vector<28x28xf32> to vector<24x24xf32>
    %11 = vector.extract_strided_slice %1 {offsets = [1, 4], sizes = [24, 24], strides = [1, 1]} : vector<28x28xf32> to vector<24x24xf32>
    %12 = vector.extract_strided_slice %1 {offsets = [2, 0], sizes = [24, 24], strides = [1, 1]} : vector<28x28xf32> to vector<24x24xf32>
    %13 = vector.extract_strided_slice %1 {offsets = [2, 1], sizes = [24, 24], strides = [1, 1]} : vector<28x28xf32> to vector<24x24xf32>
    %14 = vector.extract_strided_slice %1 {offsets = [2, 2], sizes = [24, 24], strides = [1, 1]} : vector<28x28xf32> to vector<24x24xf32>
    %15 = vector.extract_strided_slice %1 {offsets = [2, 3], sizes = [24, 24], strides = [1, 1]} : vector<28x28xf32> to vector<24x24xf32>
    %16 = vector.extract_strided_slice %1 {offsets = [2, 4], sizes = [24, 24], strides = [1, 1]} : vector<28x28xf32> to vector<24x24xf32>
    %17 = vector.extract_strided_slice %1 {offsets = [3, 0], sizes = [24, 24], strides = [1, 1]} : vector<28x28xf32> to vector<24x24xf32>
    %18 = vector.extract_strided_slice %1 {offsets = [3, 1], sizes = [24, 24], strides = [1, 1]} : vector<28x28xf32> to vector<24x24xf32>
    %19 = vector.extract_strided_slice %1 {offsets = [3, 2], sizes = [24, 24], strides = [1, 1]} : vector<28x28xf32> to vector<24x24xf32>
    %20 = vector.extract_strided_slice %1 {offsets = [3, 3], sizes = [24, 24], strides = [1, 1]} : vector<28x28xf32> to vector<24x24xf32>
    %21 = vector.extract_strided_slice %1 {offsets = [3, 4], sizes = [24, 24], strides = [1, 1]} : vector<28x28xf32> to vector<24x24xf32>
    %22 = vector.extract_strided_slice %1 {offsets = [4, 0], sizes = [24, 24], strides = [1, 1]} : vector<28x28xf32> to vector<24x24xf32>
    %23 = vector.extract_strided_slice %1 {offsets = [4, 1], sizes = [24, 24], strides = [1, 1]} : vector<28x28xf32> to vector<24x24xf32>
    %24 = vector.extract_strided_slice %1 {offsets = [4, 2], sizes = [24, 24], strides = [1, 1]} : vector<28x28xf32> to vector<24x24xf32>
    %25 = vector.extract_strided_slice %1 {offsets = [4, 3], sizes = [24, 24], strides = [1, 1]} : vector<28x28xf32> to vector<24x24xf32>
    %26 = vector.extract_strided_slice %1 {offsets = [4, 4], sizes = [24, 24], strides = [1, 1]} : vector<28x28xf32> to vector<24x24xf32>
    %27 = tpu.concatenate %2, %3, %4, %5, %6, %7, %8, %9, %10, %11, %12, %13, %14, %15, %16, %17 in 1 : vector<24x24xf32>, vector<24x24xf32>, vector<24x24xf32>, vector<24x24xf32>, vector<24x24xf32>, vector<24x24xf32>, vector<24x24xf32>, vector<24x24xf32>, vector<24x24xf32>, vector<24x24xf32>, vector<24x24xf32>, vector<24x24xf32>, vector<24x24xf32>, vector<24x24xf32>, vector<24x24xf32>, vector<24x24xf32> -> vector<24x384xf32>
    %28 = tpu.concatenate %18, %19, %20, %21, %22, %23, %24, %25, %26 in 1 : vector<24x24xf32>, vector<24x24xf32>, vector<24x24xf32>, vector<24x24xf32>, vector<24x24xf32>, vector<24x24xf32>, vector<24x24xf32>, vector<24x24xf32>, vector<24x24xf32> -> vector<24x216xf32>
    %29 = tpu.concatenate %27, %28 in 1 : vector<24x384xf32>, vector<24x216xf32> -> vector<24x600xf32>
    %30 = arith.truncf %29 : vector<24x600xf32> to vector<24x600xbf16>
    %c0_2 = arith.constant 0 : index
    %c0_3 = arith.constant 0 : index
    %31 = vector.load %arg2[%c0_2, %c0_3] : memref<600x144xbf16, #tpu.memory_space<vmem>>, vector<600x144xbf16>
    %cst = arith.constant dense<0.000000e+00> : vector<24x144xf32>
    %32 = tpu.matmul %30, %31, %cst {dimension_numbers = #tpu.dot_dimension_numbers<[1], [0], [0], [1], [0, 0, 1, 1], [], []>} : vector<24x600xbf16>, vector<600x144xbf16>, vector<24x144xf32> -> vector<24x144xf32>
    %c0_4 = arith.constant 0 : index
    %c0_5 = arith.constant 0 : index
    %33 = vector.load %arg3[%c0_4, %c0_5] : memref<1x144xf32, #tpu.memory_space<vmem>>, vector<1x144xf32>
    %34 = vector.broadcast %33 : vector<1x144xf32> to vector<24x144xf32>
    %35 = arith.addf %32, %34 : vector<24x144xf32>
    %c0_6 = arith.constant 0 : index
    %c0_7 = arith.constant 0 : index
    %36 = vector.load %arg4[%c0_6, %c0_7] : memref<12x24xf32, #tpu.memory_space<vmem>>, vector<12x24xf32>
    %cst_8 = arith.constant dense<0.000000e+00> : vector<12x144xf32>
    %37 = tpu.matmul %36, %35, %cst_8 {dimension_numbers = #tpu.dot_dimension_numbers<[1], [0], [0], [1], [0, 0, 1, 1], [], []>} : vector<12x24xf32>, vector<24x144xf32>, vector<12x144xf32> -> vector<12x144xf32>
    %c0_9 = arith.constant 0 : index
    %c0_10 = arith.constant 0 : index
    %38 = vector.load %arg5[%c0_9, %c0_10] : memref<12x24xf32, #tpu.memory_space<vmem>>, vector<12x24xf32>
    %cst_11 = arith.constant dense<0.000000e+00> : vector<12x144xf32>
    %39 = tpu.matmul %38, %35, %cst_11 {dimension_numbers = #tpu.dot_dimension_numbers<[1], [0], [0], [1], [0, 0, 1, 1], [], []>} : vector<12x24xf32>, vector<24x144xf32>, vector<12x144xf32> -> vector<12x144xf32>
    %40 = arith.maximumf %37, %39 : vector<12x144xf32>
    %c0_12 = arith.constant 0 : index
    %c0_13 = arith.constant 0 : index
    %41 = vector.load %arg6[%c0_12, %c0_13] : memref<144x72xf32, #tpu.memory_space<vmem>>, vector<144x72xf32>
    %cst_14 = arith.constant dense<0.000000e+00> : vector<12x72xf32>
    %42 = tpu.matmul %40, %41, %cst_14 {dimension_numbers = #tpu.dot_dimension_numbers<[1], [0], [0], [1], [0, 0, 1, 1], [], []>} : vector<12x144xf32>, vector<144x72xf32>, vector<12x72xf32> -> vector<12x72xf32>
    %c0_15 = arith.constant 0 : index
    %c0_16 = arith.constant 0 : index
    %43 = vector.load %arg7[%c0_15, %c0_16] : memref<144x72xf32, #tpu.memory_space<vmem>>, vector<144x72xf32>
    %cst_17 = arith.constant dense<0.000000e+00> : vector<12x72xf32>
    %44 = tpu.matmul %40, %43, %cst_17 {dimension_numbers = #tpu.dot_dimension_numbers<[1], [0], [0], [1], [0, 0, 1, 1], [], []>} : vector<12x144xf32>, vector<144x72xf32>, vector<12x72xf32> -> vector<12x72xf32>
    %45 = arith.maximumf %42, %44 : vector<12x72xf32>
    %cst_18 = arith.constant 0.000000e+00 : f32
    %46 = vector.broadcast %cst_18 : f32 to vector<12x72xf32>
    %47 = arith.maximumf %45, %46 : vector<12x72xf32>
    %48 = vector.extract_strided_slice %47 {offsets = [0, 0], sizes = [8, 48], strides = [1, 1]} : vector<12x72xf32> to vector<8x48xf32>
    %49 = vector.extract_strided_slice %47 {offsets = [0, 6], sizes = [8, 48], strides = [1, 1]} : vector<12x72xf32> to vector<8x48xf32>
    %50 = vector.extract_strided_slice %47 {offsets = [0, 12], sizes = [8, 48], strides = [1, 1]} : vector<12x72xf32> to vector<8x48xf32>
    %51 = vector.extract_strided_slice %47 {offsets = [0, 18], sizes = [8, 48], strides = [1, 1]} : vector<12x72xf32> to vector<8x48xf32>
    %52 = vector.extract_strided_slice %47 {offsets = [0, 24], sizes = [8, 48], strides = [1, 1]} : vector<12x72xf32> to vector<8x48xf32>
    %53 = vector.extract_strided_slice %47 {offsets = [1, 0], sizes = [8, 48], strides = [1, 1]} : vector<12x72xf32> to vector<8x48xf32>
    %54 = vector.extract_strided_slice %47 {offsets = [1, 6], sizes = [8, 48], strides = [1, 1]} : vector<12x72xf32> to vector<8x48xf32>
    %55 = vector.extract_strided_slice %47 {offsets = [1, 12], sizes = [8, 48], strides = [1, 1]} : vector<12x72xf32> to vector<8x48xf32>
    %56 = vector.extract_strided_slice %47 {offsets = [1, 18], sizes = [8, 48], strides = [1, 1]} : vector<12x72xf32> to vector<8x48xf32>
    %57 = vector.extract_strided_slice %47 {offsets = [1, 24], sizes = [8, 48], strides = [1, 1]} : vector<12x72xf32> to vector<8x48xf32>
    %58 = vector.extract_strided_slice %47 {offsets = [2, 0], sizes = [8, 48], strides = [1, 1]} : vector<12x72xf32> to vector<8x48xf32>
    %59 = vector.extract_strided_slice %47 {offsets = [2, 6], sizes = [8, 48], strides = [1, 1]} : vector<12x72xf32> to vector<8x48xf32>
    %60 = vector.extract_strided_slice %47 {offsets = [2, 12], sizes = [8, 48], strides = [1, 1]} : vector<12x72xf32> to vector<8x48xf32>
    %61 = vector.extract_strided_slice %47 {offsets = [2, 18], sizes = [8, 48], strides = [1, 1]} : vector<12x72xf32> to vector<8x48xf32>
    %62 = vector.extract_strided_slice %47 {offsets = [2, 24], sizes = [8, 48], strides = [1, 1]} : vector<12x72xf32> to vector<8x48xf32>
    %63 = vector.extract_strided_slice %47 {offsets = [3, 0], sizes = [8, 48], strides = [1, 1]} : vector<12x72xf32> to vector<8x48xf32>
    %64 = vector.extract_strided_slice %47 {offsets = [3, 6], sizes = [8, 48], strides = [1, 1]} : vector<12x72xf32> to vector<8x48xf32>
    %65 = vector.extract_strided_slice %47 {offsets = [3, 12], sizes = [8, 48], strides = [1, 1]} : vector<12x72xf32> to vector<8x48xf32>
    %66 = vector.extract_strided_slice %47 {offsets = [3, 18], sizes = [8, 48], strides = [1, 1]} : vector<12x72xf32> to vector<8x48xf32>
    %67 = vector.extract_strided_slice %47 {offsets = [3, 24], sizes = [8, 48], strides = [1, 1]} : vector<12x72xf32> to vector<8x48xf32>
    %68 = vector.extract_strided_slice %47 {offsets = [4, 0], sizes = [8, 48], strides = [1, 1]} : vector<12x72xf32> to vector<8x48xf32>
    %69 = vector.extract_strided_slice %47 {offsets = [4, 6], sizes = [8, 48], strides = [1, 1]} : vector<12x72xf32> to vector<8x48xf32>
    %70 = vector.extract_strided_slice %47 {offsets = [4, 12], sizes = [8, 48], strides = [1, 1]} : vector<12x72xf32> to vector<8x48xf32>
    %71 = vector.extract_strided_slice %47 {offsets = [4, 18], sizes = [8, 48], strides = [1, 1]} : vector<12x72xf32> to vector<8x48xf32>
    %72 = vector.extract_strided_slice %47 {offsets = [4, 24], sizes = [8, 48], strides = [1, 1]} : vector<12x72xf32> to vector<8x48xf32>
    %73 = tpu.concatenate %48, %49, %50, %51, %52, %53, %54, %55, %56, %57, %58, %59, %60, %61, %62, %63 in 1 : vector<8x48xf32>, vector<8x48xf32>, vector<8x48xf32>, vector<8x48xf32>, vector<8x48xf32>, vector<8x48xf32>, vector<8x48xf32>, vector<8x48xf32>, vector<8x48xf32>, vector<8x48xf32>, vector<8x48xf32>, vector<8x48xf32>, vector<8x48xf32>, vector<8x48xf32>, vector<8x48xf32>, vector<8x48xf32> -> vector<8x768xf32>
    %74 = tpu.concatenate %64, %65, %66, %67, %68, %69, %70, %71, %72 in 1 : vector<8x48xf32>, vector<8x48xf32>, vector<8x48xf32>, vector<8x48xf32>, vector<8x48xf32>, vector<8x48xf32>, vector<8x48xf32>, vector<8x48xf32>, vector<8x48xf32> -> vector<8x432xf32>
    %75 = tpu.concatenate %73, %74 in 1 : vector<8x768xf32>, vector<8x432xf32> -> vector<8x1200xf32>
    %76 = arith.truncf %75 : vector<8x1200xf32> to vector<8x1200xbf16>
    %c0_19 = arith.constant 0 : index
    %c0_20 = arith.constant 0 : index
    %77 = vector.load %arg8[%c0_19, %c0_20] : memref<1200x128xbf16, #tpu.memory_space<vmem>>, vector<1200x128xbf16>
    %cst_21 = arith.constant dense<0.000000e+00> : vector<8x128xf32>
    %78 = tpu.matmul %76, %77, %cst_21 {dimension_numbers = #tpu.dot_dimension_numbers<[1], [0], [0], [1], [0, 0, 1, 1], [], []>} : vector<8x1200xbf16>, vector<1200x128xbf16>, vector<8x128xf32> -> vector<8x128xf32>
    %c0_22 = arith.constant 0 : index
    %c0_23 = arith.constant 0 : index
    %79 = vector.load %arg9[%c0_22, %c0_23] : memref<1x128xf32, #tpu.memory_space<vmem>>, vector<1x128xf32>
    %80 = vector.broadcast %79 : vector<1x128xf32> to vector<8x128xf32>
    %81 = arith.addf %78, %80 : vector<8x128xf32>
    %c0_24 = arith.constant 0 : index
    %c0_25 = arith.constant 0 : index
    %82 = vector.load %arg10[%c0_24, %c0_25] : memref<4x8xf32, #tpu.memory_space<vmem>>, vector<4x8xf32>
    %cst_26 = arith.constant dense<0.000000e+00> : vector<4x128xf32>
    %83 = tpu.matmul %82, %81, %cst_26 {dimension_numbers = #tpu.dot_dimension_numbers<[1], [0], [0], [1], [0, 0, 1, 1], [], []>} : vector<4x8xf32>, vector<8x128xf32>, vector<4x128xf32> -> vector<4x128xf32>
    %c0_27 = arith.constant 0 : index
    %c0_28 = arith.constant 0 : index
    %84 = vector.load %arg11[%c0_27, %c0_28] : memref<4x8xf32, #tpu.memory_space<vmem>>, vector<4x8xf32>
    %cst_29 = arith.constant dense<0.000000e+00> : vector<4x128xf32>
    %85 = tpu.matmul %84, %81, %cst_29 {dimension_numbers = #tpu.dot_dimension_numbers<[1], [0], [0], [1], [0, 0, 1, 1], [], []>} : vector<4x8xf32>, vector<8x128xf32>, vector<4x128xf32> -> vector<4x128xf32>
    %86 = arith.maximumf %83, %85 : vector<4x128xf32>
    %c0_30 = arith.constant 0 : index
    %c0_31 = arith.constant 0 : index
    %87 = vector.load %arg12[%c0_30, %c0_31] : memref<128x64xf32, #tpu.memory_space<vmem>>, vector<128x64xf32>
    %cst_32 = arith.constant dense<0.000000e+00> : vector<4x64xf32>
    %88 = tpu.matmul %86, %87, %cst_32 {dimension_numbers = #tpu.dot_dimension_numbers<[1], [0], [0], [1], [0, 0, 1, 1], [], []>} : vector<4x128xf32>, vector<128x64xf32>, vector<4x64xf32> -> vector<4x64xf32>
    %c0_33 = arith.constant 0 : index
    %c0_34 = arith.constant 0 : index
    %89 = vector.load %arg13[%c0_33, %c0_34] : memref<128x64xf32, #tpu.memory_space<vmem>>, vector<128x64xf32>
    %cst_35 = arith.constant dense<0.000000e+00> : vector<4x64xf32>
    %90 = tpu.matmul %86, %89, %cst_35 {dimension_numbers = #tpu.dot_dimension_numbers<[1], [0], [0], [1], [0, 0, 1, 1], [], []>} : vector<4x128xf32>, vector<128x64xf32>, vector<4x64xf32> -> vector<4x64xf32>
    %91 = arith.maximumf %88, %90 : vector<4x64xf32>
    %cst_36 = arith.constant 0.000000e+00 : f32
    %92 = vector.broadcast %cst_36 : f32 to vector<4x64xf32>
    %93 = arith.maximumf %91, %92 : vector<4x64xf32>
    %94 = vector.extract_strided_slice %93 {offsets = [0, 0], sizes = [1, 64], strides = [1, 1]} : vector<4x64xf32> to vector<1x64xf32>
    %95 = vector.extract_strided_slice %93 {offsets = [1, 0], sizes = [1, 64], strides = [1, 1]} : vector<4x64xf32> to vector<1x64xf32>
    %96 = vector.extract_strided_slice %93 {offsets = [2, 0], sizes = [1, 64], strides = [1, 1]} : vector<4x64xf32> to vector<1x64xf32>
    %97 = vector.extract_strided_slice %93 {offsets = [3, 0], sizes = [1, 64], strides = [1, 1]} : vector<4x64xf32> to vector<1x64xf32>
    %98 = tpu.concatenate %94, %95, %96, %97 in 1 : vector<1x64xf32>, vector<1x64xf32>, vector<1x64xf32>, vector<1x64xf32> -> vector<1x256xf32>
    %99 = arith.truncf %98 : vector<1x256xf32> to vector<1x256xbf16>
    %c0_37 = arith.constant 0 : index
    %c0_38 = arith.constant 0 : index
    %100 = vector.load %arg14[%c0_37, %c0_38] : memref<256x120xbf16, #tpu.memory_space<vmem>>, vector<256x120xbf16>
    %cst_39 = arith.constant dense<0.000000e+00> : vector<1x120xf32>
    %101 = tpu.matmul %99, %100, %cst_39 {dimension_numbers = #tpu.dot_dimension_numbers<[1], [0], [0], [1], [0, 0, 1, 1], [], []>} : vector<1x256xbf16>, vector<256x120xbf16>, vector<1x120xf32> -> vector<1x120xf32>
    %c0_40 = arith.constant 0 : index
    %c0_41 = arith.constant 0 : index
    %102 = vector.load %arg15[%c0_40, %c0_41] : memref<1x120xf32, #tpu.memory_space<vmem>>, vector<1x120xf32>
    %103 = arith.addf %101, %102 : vector<1x120xf32>
    %cst_42 = arith.constant 0.000000e+00 : f32
    %104 = vector.broadcast %cst_42 : f32 to vector<1x120xf32>
    %105 = arith.maximumf %103, %104 : vector<1x120xf32>
    %106 = arith.truncf %105 : vector<1x120xf32> to vector<1x120xbf16>
    %c0_43 = arith.constant 0 : index
    %c0_44 = arith.constant 0 : index
    %107 = vector.load %arg16[%c0_43, %c0_44] : memref<120x84xbf16, #tpu.memory_space<vmem>>, vector<120x84xbf16>
    %cst_45 = arith.constant dense<0.000000e+00> : vector<1x84xf32>
    %108 = tpu.matmul %106, %107, %cst_45 {dimension_numbers = #tpu.dot_dimension_numbers<[1], [0], [0], [1], [0, 0, 1, 1], [], []>} : vector<1x120xbf16>, vector<120x84xbf16>, vector<1x84xf32> -> vector<1x84xf32>
    %c0_46 = arith.constant 0 : index
    %c0_47 = arith.constant 0 : index
    %109 = vector.load %arg17[%c0_46, %c0_47] : memref<1x84xf32, #tpu.memory_space<vmem>>, vector<1x84xf32>
    %110 = arith.addf %108, %109 : vector<1x84xf32>
    %cst_48 = arith.constant 0.000000e+00 : f32
    %111 = vector.broadcast %cst_48 : f32 to vector<1x84xf32>
    %112 = arith.maximumf %110, %111 : vector<1x84xf32>
    %113 = arith.truncf %112 : vector<1x84xf32> to vector<1x84xbf16>
    %c0_49 = arith.constant 0 : index
    %c0_50 = arith.constant 0 : index
    %114 = vector.load %arg18[%c0_49, %c0_50] : memref<84x10xbf16, #tpu.memory_space<vmem>>, vector<84x10xbf16>
    %cst_51 = arith.constant dense<0.000000e+00> : vector<1x10xf32>
    %115 = tpu.matmul %113, %114, %cst_51 {dimension_numbers = #tpu.dot_dimension_numbers<[1], [0], [0], [1], [0, 0, 1, 1], [], []>} : vector<1x84xbf16>, vector<84x10xbf16>, vector<1x10xf32> -> vector<1x10xf32>
    %c0_52 = arith.constant 0 : index
    %c0_53 = arith.constant 0 : index
    %116 = vector.load %arg19[%c0_52, %c0_53] : memref<1x10xf32, #tpu.memory_space<vmem>>, vector<1x10xf32>
    %117 = arith.addf %115, %116 : vector<1x10xf32>
    %cst_54 = arith.constant dense<0xFF800000> : vector<1xf32>
    %118 = vector.multi_reduction <maximumf>, %117, %cst_54 [1] : vector<1x10xf32> to vector<1xf32>
    %119 = vector.shape_cast %118 : vector<1xf32> to vector<1x1xf32>
    %120 = vector.broadcast %119 : vector<1x1xf32> to vector<1x10xf32>
    %121 = arith.subf %117, %120 : vector<1x10xf32>
    %122 = math.exp %121 : vector<1x10xf32>
    %cst_55 = arith.constant dense<0.000000e+00> : vector<1xf32>
    %123 = vector.multi_reduction <add>, %122, %cst_55 [1] : vector<1x10xf32> to vector<1xf32>
    %124 = vector.shape_cast %123 : vector<1xf32> to vector<1x1xf32>
    %125 = tpu.reciprocal %124 {approx = true} : vector<1x1xf32> -> vector<1x1xf32>
    %126 = vector.broadcast %125 : vector<1x1xf32> to vector<1x10xf32>
    %127 = arith.mulf %122, %126 : vector<1x10xf32>
    %c0_56 = arith.constant 0 : index
    %c0_57 = arith.constant 0 : index
    %c0_58 = arith.constant 0 : index
    %128 = vector.load %arg20[%c0_56, %c0_57, %c0_58] : memref<1x1x10xf32, #tpu.memory_space<vmem>>, vector<1x1x10xf32>
    %129 = vector.shape_cast %128 : vector<1x1x10xf32> to vector<1x10xf32>
    %130 = vector.shape_cast %127 : vector<1x10xf32> to vector<1x1x10xf32>
    tpu.vector_store %arg20[%c0_56, %c0_57, %c0_58], %130 {strides = array<i32>} : memref<1x1x10xf32, #tpu.memory_space<vmem>>, vector<1x1x10xf32>,
    return
  }
  func.func @transform_0(%arg0: i32) -> (i32, i32, i32) {
    %c0_i32 = arith.constant 0 : i32
    %c0_i32_0 = arith.constant 0 : i32
    %c0_i32_1 = arith.constant 0 : i32
    return %arg0, %c0_i32, %c0_i32_0 : i32, i32, i32
  }
  func.func @transform_1(%arg0: i32) -> (i32, i32) {
    %c0_i32 = arith.constant 0 : i32
    %c0_i32_0 = arith.constant 0 : i32
    %c0_i32_1 = arith.constant 0 : i32
    return %c0_i32, %c0_i32_0 : i32, i32
  }
  func.func @transform_2(%arg0: i32) -> (i32, i32) {
    %c0_i32 = arith.constant 0 : i32
    %c0_i32_0 = arith.constant 0 : i32
    %c0_i32_1 = arith.constant 0 : i32
    return %c0_i32, %c0_i32_0 : i32, i32
  }
  func.func @transform_3(%arg0: i32) -> (i32, i32) {
    %c0_i32 = arith.constant 0 : i32
    %c0_i32_0 = arith.constant 0 : i32
    %c0_i32_1 = arith.constant 0 : i32
    return %c0_i32, %c0_i32_0 : i32, i32
  }
  func.func @transform_4(%arg0: i32) -> (i32, i32) {
    %c0_i32 = arith.constant 0 : i32
    %c0_i32_0 = arith.constant 0 : i32
    %c0_i32_1 = arith.constant 0 : i32
    return %c0_i32, %c0_i32_0 : i32, i32
  }
  func.func @transform_5(%arg0: i32) -> (i32, i32) {
    %c0_i32 = arith.constant 0 : i32
    %c0_i32_0 = arith.constant 0 : i32
    %c0_i32_1 = arith.constant 0 : i32
    return %c0_i32, %c0_i32_0 : i32, i32
  }
  func.func @transform_6(%arg0: i32) -> (i32, i32) {
    %c0_i32 = arith.constant 0 : i32
    %c0_i32_0 = arith.constant 0 : i32
    %c0_i32_1 = arith.constant 0 : i32
    return %c0_i32, %c0_i32_0 : i32, i32
  }
  func.func @transform_7(%arg0: i32) -> (i32, i32) {
    %c0_i32 = arith.constant 0 : i32
    %c0_i32_0 = arith.constant 0 : i32
    %c0_i32_1 = arith.constant 0 : i32
    return %c0_i32, %c0_i32_0 : i32, i32
  }
  func.func @transform_8(%arg0: i32) -> (i32, i32) {
    %c0_i32 = arith.constant 0 : i32
    %c0_i32_0 = arith.constant 0 : i32
    %c0_i32_1 = arith.constant 0 : i32
    return %c0_i32, %c0_i32_0 : i32, i32
  }
  func.func @transform_9(%arg0: i32) -> (i32, i32) {
    %c0_i32 = arith.constant 0 : i32
    %c0_i32_0 = arith.constant 0 : i32
    %c0_i32_1 = arith.constant 0 : i32
    return %c0_i32, %c0_i32_0 : i32, i32
  }
  func.func @transform_10(%arg0: i32) -> (i32, i32) {
    %c0_i32 = arith.constant 0 : i32
    %c0_i32_0 = arith.constant 0 : i32
    %c0_i32_1 = arith.constant 0 : i32
    return %c0_i32, %c0_i32_0 : i32, i32
  }
  func.func @transform_11(%arg0: i32) -> (i32, i32) {
    %c0_i32 = arith.constant 0 : i32
    %c0_i32_0 = arith.constant 0 : i32
    %c0_i32_1 = arith.constant 0 : i32
    return %c0_i32, %c0_i32_0 : i32, i32
  }
  func.func @transform_12(%arg0: i32) -> (i32, i32) {
    %c0_i32 = arith.constant 0 : i32
    %c0_i32_0 = arith.constant 0 : i32
    %c0_i32_1 = arith.constant 0 : i32
    return %c0_i32, %c0_i32_0 : i32, i32
  }
  func.func @transform_13(%arg0: i32) -> (i32, i32) {
    %c0_i32 = arith.constant 0 : i32
    %c0_i32_0 = arith.constant 0 : i32
    %c0_i32_1 = arith.constant 0 : i32
    return %c0_i32, %c0_i32_0 : i32, i32
  }
  func.func @transform_14(%arg0: i32) -> (i32, i32) {
    %c0_i32 = arith.constant 0 : i32
    %c0_i32_0 = arith.constant 0 : i32
    %c0_i32_1 = arith.constant 0 : i32
    return %c0_i32, %c0_i32_0 : i32, i32
  }
  func.func @transform_15(%arg0: i32) -> (i32, i32) {
    %c0_i32 = arith.constant 0 : i32
    %c0_i32_0 = arith.constant 0 : i32
    %c0_i32_1 = arith.constant 0 : i32
    return %c0_i32, %c0_i32_0 : i32, i32
  }
  func.func @transform_16(%arg0: i32) -> (i32, i32) {
    %c0_i32 = arith.constant 0 : i32
    %c0_i32_0 = arith.constant 0 : i32
    %c0_i32_1 = arith.constant 0 : i32
    return %c0_i32, %c0_i32_0 : i32, i32
  }
  func.func @transform_17(%arg0: i32) -> (i32, i32) {
    %c0_i32 = arith.constant 0 : i32
    %c0_i32_0 = arith.constant 0 : i32
    %c0_i32_1 = arith.constant 0 : i32
    return %c0_i32, %c0_i32_0 : i32, i32
  }
  func.func @transform_18(%arg0: i32) -> (i32, i32) {
    %c0_i32 = arith.constant 0 : i32
    %c0_i32_0 = arith.constant 0 : i32
    %c0_i32_1 = arith.constant 0 : i32
    return %c0_i32, %c0_i32_0 : i32, i32
  }
  func.func @transform_19(%arg0: i32) -> (i32, i32, i32) {
    %c0_i32 = arith.constant 0 : i32
    %c0_i32_0 = arith.constant 0 : i32
    %c0_i32_1 = arith.constant 0 : i32
    return %arg0, %c0_i32, %c0_i32_0 : i32, i32, i32
  }
}

</mosaic_0001>

<bundles_post_ra>
// kernel: mnist_net_forward.1
= control target key start
LH: loop header
LB: loop body
LE: loop exit
PB: predicated region body
PF: predicated region fallthrough
CT: control target
= control target key end

     0   :  { %s6451_s0 = inlined_call_operand.vmem [shape: f32[2,28,28], index: 0, kind: input, shape index: {}]   ;;  %s6452_s1 = inlined_call_operand.vmem [shape: bf16[600,144], index: 1, kind: input, shape index: {}]   ;;  %s6453_s2 = inlined_call_operand.vmem [shape: f32[1,144], index: 2, kind: input, shape index: {}]   ;;  %s6454_s3 = inlined_call_operand.vmem [shape: f32[12,24], index: 3, kind: input, shape index: {}]   ;;  %s6455_s4 = inlined_call_operand.vmem [shape: f32[12,24], index: 4, kind: input, shape index: {}]   ;;  %s6456_s5 = inlined_call_operand.vmem [shape: f32[144,72], index: 5, kind: input, shape index: {}]   ;;  %s6457_s6 = inlined_call_operand.vmem [shape: f32[144,72], index: 6, kind: input, shape index: {}]   ;;  %s6458_s7 = inlined_call_operand.vmem [shape: bf16[1200,128], index: 7, kind: input, shape index: {}]   ;;  %s6459_s8 = inlined_call_operand.vmem [shape: f32[1,128], index: 8, kind: input, shape index: {}]   ;;  %s6460_s9 = inlined_call_operand.vmem [shape: f32[4,8], index: 9, kind: input, shape index: {}]   ;;  %s6461_s10 = inlined_call_operand.vmem [shape: f32[4,8], index: 10, kind: input, shape index: {}]   ;;  %s6462_s11 = inlined_call_operand.vmem [shape: f32[128,64], index: 11, kind: input, shape index: {}]   ;;  %s6463_s12 = inlined_call_operand.vmem [shape: f32[128,64], index: 12, kind: input, shape index: {}]   ;;  %s6464_s13 = inlined_call_operand.vmem [shape: bf16[256,120], index: 13, kind: input, shape index: {}]   ;;  %s6465_s14 = inlined_call_operand.vmem [shape: f32[1,120], index: 14, kind: input, shape index: {}]   ;;  %s6466_s15 = inlined_call_operand.vmem [shape: bf16[120,84], index: 15, kind: input, shape index: {}]   ;;  %s6467_s16 = inlined_call_operand.vmem [shape: f32[1,84], index: 16, kind: input, shape index: {}]   ;;  %s6468_s17 = inlined_call_operand.vmem [shape: bf16[84,10], index: 17, kind: input, shape index: {}]   ;;  %s6469_s18 = inlined_call_operand.vmem [shape: f32[1,10], index: 18, kind: input, shape index: {}]   ;;  %s6470_s19 = inlined_call_operand.hbm [shape: f32[2,1,10], index: 19, kind: output, shape index: {}]  }
   0x1   :  { %6495 = sst [smem:[#allocation11_spill]] %s6451_s0 }
   0x2   :  { %6496 = sst [smem:[#allocation12_spill]] %s6452_s1 }
   0x3   :  { %6497 = sst [smem:[#allocation13_spill]] %s6453_s2 }
   0x4   :  { %6498 = sst [smem:[#allocation14_spill]] %s6454_s3 }
   0x5   :  { %6499 = sst [smem:[#allocation15_spill]] %s6470_s19 }
   0x6   :  { %24 = vsyncpa [#allocation3], 0 }
   0x7   :  { %26 = vsyncpa [#allocation3 + $0x1], 0  ;;  %s5113_s0 = smov 0   ;;  %s5115_s30 = smov 0  }
   0x8   :  { %s5117_s20 = smov 0   ;;  %s5119_s21 = smov 0  }
   0x9 LB: > { %6500 = sst [smem:[#allocation5_spill]] %s4952_s0  ;;  %s5134_s1 = sadd.s32 4294967295, %s4964_s21   ;;  %s4964_s21 = sphi %s5119_s21, %s6531_s21   ;;  %s4960_s20 = sphi %s5117_s20, %s6533_s20   ;;  %s4956_s30 = sphi %s5115_s30, %s6535_s30   ;;  %s4952_s0 = sphi %s5113_s0, %s6534_s0  }
   0xa   : > { %6501 = sst [smem:[#allocation6_spill]] %s4960_s20  ;;  %s3774_s22 = sadd.s32 4294967294, %s4964_s21  }
   0xb   : > { %6502 = sst [smem:[#allocation7_spill]] %s4964_s21  ;;  %s5138_s2 = sadd.s32 1, %s4964_s21  }
   0xc   : > { %6503 = sst [smem:[#allocation8_spill]] %s5138_s2  ;;  %s443_s23 = sadd.s32 1, %s4960_s20 }
   0xd   : > { %s440_s24 = ssub.s32 %s4964_s21, %s5138_s2  ;;  %p453_p0 = scmp.ne.s32.totalorder %s4960_s20, %s4956_s30 }
   0xe   : > { %p441_p1 = scmp.eq.s32.totalorder %s440_s24, 0  ;;  %p454_p2 = scmp.eq.s32.totalorder %s5134_s1, 1 }
   0xf   : > { %p459_p3 = scmp.ne.s32.totalorder %s4956_s30, %s4952_s0  ;;  %p460_p4 = scmp.eq.s32.totalorder %s3774_s22, 1 }
  0x10   : > { %s5149_s25 = scalar_select %p441_p1, %s4960_s20, %s443_s23  }
  0x11   : > { %p5151_p5 = por %p454_p2, %p453_p0  ;;  %p5155_p6 = por %p460_p4, %p459_p3 }
  0x12   : > { %6504 = sst [smem:[#allocation9_spill]] %s5149_s25  ;;  %p3777_p7 = scmp.ge.s32.totalorder %s4964_s21, 1 }
  0x13   : > { %s6506_s26 = scalar_select %p5155_p6, 1, 0 }
  0x14   : > { %p540_p8 = scmp.lt.s32.totalorder %s4964_s21, 3 }
  0x15   : > { %6507 = sst [smem:[#allocation10_spill]] %s6506_s26 }
  0x16   : > { %p541_p9 = pnand %p3777_p7, %p540_p8 }
  0x17   : > { %p595_p10 = scmp.lt.s32.totalorder (!%p541_p9), %s5134_s1, 1  ;;  %s6508_s29 = sld [smem:[#allocation12_spill]] (!%p541_p9)  ;;  %vm645_vm0 = vcmask (!%p541_p9), 1046528   ;;  %vm698_vm1 = vcmask (!%p541_p9), 1045504   ;;  %vm751_vm2 = vcmask (!%p541_p9), 1044480   ;;  %vm788_vm3 = vcmask (!%p541_p9), 130048  }
  0x18   : > { %544 = sbr.rel (%p541_p9) target bundleno = 2954 (0xb8a), region = 96  ;;  %s6509_s27 = sld [smem:[#allocation11_spill]] (!%p541_p9)  ;;  %vm792_vm4 = vcmask (!%p541_p9), 326656   ;;  %vm768_vm5 = vcmask (!%p541_p9), 195584   ;;  %vm796_vm6 = vcmask (!%p541_p9), 523264   ;;  %vm772_vm7 = vcmask (!%p541_p9), 392192  }
  0x19   : > { %s6480_s20 = smov (!%p541_p9), 46   ;;  %s6488_s21 = smov (!%p541_p9), 23   ;;  %vm776_vm8 = vcmask (!%p541_p9), 588800   ;;  %vm780_vm9 = vcmask (!%p541_p9), 785408   ;;  %vm800_vm10 = vcmask (!%p541_p9), 719872   ;;  %vm6491_vm11 = vcmask (!%p541_p9), 916480  }
  0x1a   : > { %s6489_s23 = smov (!%p541_p9), 120   ;;  %s6487_s25 = smov (!%p541_p9), 61   ;;  %vm784_vm12 = vcmask (!%p541_p9), 982016   ;;  %vm808_vm13 = vcmask (!%p541_p9), 64512   ;;  %vm812_vm14 = vcmask (!%p541_p9), 261120   ;;  %vm816_vm15 = vcmask (!%p541_p9), 457728  }
  0x1b   : > { %s4971_s26 = smov (!%p541_p9), 15   ;;  %s6514_s24 = smov (!%p541_p9), 69  }
  0x1c   : > { %s4983_s0 = smov (!%p541_p9), 30   ;;  %s4987_s19 = smov (!%p541_p9), 14  }
  0x1d   : > { %v4679_v0 = vld [vmem:[%s6508_s29 + $0x4] ss:$8 sps:$4 sm:$0xff] (!%p541_p9)   ;;  %v4681_v1 = vld [vmem:[%s6508_s29] ss:$8 sps:$4 sm:$0xff] (!%p541_p9)   ;;  %v4682_v2 = vld [vmem:[%s6508_s29 + $0x14] ss:$8 sps:$4 sm:$0xff] (!%p541_p9)  }
  0x1e   : > { %1481 = vmatprep.subr.bf16.mxu0 (!%p541_p9), %v4679_v0  ;;  %v4684_v3 = vld [vmem:[%s6508_s29 + $0x10] ss:$8 sps:$4 sm:$0xff] (!%p541_p9)   ;;  %v4685_v4 = vld [vmem:[%s6508_s29 + $0x24] ss:$8 sps:$4 sm:$0xff] (!%p541_p9)   ;;  %v4687_v12 = vld [vmem:[%s6508_s29 + $0x20] ss:$8 sps:$4 sm:$0xff] (!%p541_p9)  }
  0x1f   : > { %s596_s22 = scalar_select %p595_p10, %s5134_s1, 1  ;;  %1482 = vmatpush1.bf16.msra.mxu0 %v4681_v1  ;;  %v4688_v15 = vld [vmem:[%s6508_s29 + $0x34] ss:$8 sps:$4 sm:$0xff]   ;;  %v4690_v17 = vld [vmem:[%s6508_s29 + $0x30] ss:$8 sps:$4 sm:$0xff]  }
  0x20   : > { %1483 = vmatprep.subr.bf16.mxu0 %v4682_v2  ;;  %v4691_v21 = vld [vmem:[%s6508_s29 + $0x44] ss:$8 sps:$4 sm:$0xff]   ;;  %v4693_v22 = vld [vmem:[%s6508_s29 + $0x40] ss:$8 sps:$4 sm:$0xff]   ;;  %v4694_v25 = vld [vmem:[%s6508_s29 + $0x54] ss:$8 sps:$4 sm:$0xff]  }
  0x21   : > { %s3981_s2 = sshll.u32 %s596_s22, 5  ;;  %v4696_v27 = vld [vmem:[%s6508_s29 + $0x50] ss:$8 sps:$4 sm:$0xff]   ;;  %v4697_v30 = vld [vmem:[%s6508_s29 + $0x64] ss:$8 sps:$4 sm:$0xff]   ;;  %s6510_s22 = smov 23  }
  0x22   : > { %s5178_s28 = scalar_lea.vmem %s6509_s27, %s3981_s2  ;;  %s4968_s27 = smov 38   ;;  %v4699_v31 = vld [vmem:[%s6508_s29 + $0x60] ss:$8 sps:$4 sm:$0xff]   ;;  %v4700_v33 = vld [vmem:[%s6508_s29 + $0x74] ss:$8 sps:$4 sm:$0xff]  }
  0x23   : > { %v5184_v5 = vld [vmem:[%s5178_s28] sm:$0xff]  ;;  %v5187_v6 = vld [vmem:[%s5178_s28 + $0x8] sm:$0xff]  ;;  %v5190_v7 = vld [vmem:[%s5178_s28 + $0x10] sm:$0xff]  ;;  %1484 = vmatpush1.bf16.msra.mxu0 %v4684_v3  ;;  %s6481_s2 = smov 84  }
  0x24   : > { %v5194_v8 = vpack.i.bf16 %v5187_v6, %v5184_v5  ;;  %v646_v9 = vrot.slane %v5184_v5, 1  ;;  %v647_v10 = vrot.slane %v5187_v6, 1  ;;  %v649_v11 = vrot.slane %v5190_v7, 1  ;;  %1485 = vmatprep.subr.bf16.mxu0 %v4685_v4  ;;  %v5238_v26 = vld [vmem:[%s5178_s28 + $0x18] sm:$0xf] }
  0x25   : > { %v699_v18 = vrot.slane %v5184_v5, 2  ;;  %v700_v19 = vrot.slane %v5187_v6, 2  ;;  %v702_v20 = vrot.slane %v5190_v7, 2  ;;  %v5250_v29 = vrot.slane %v5238_v26, 1  ;;  %v4702_v34 = vld [vmem:[%s6508_s29 + $0x70] ss:$8 sps:$4 sm:$0xff]  }
  0x26   : > { %4485 = vrot.lane.b32.xlu0 %v5194_v8, %s6480_s20  ;;  %4480 = vrot.lane.b32.xlu1 %v5194_v8, %s6488_s21  ;;  %v648_v13 = vsel %vm645_vm0, %v646_v9, %v647_v10  ;;  %v650_v14 = vsel %vm645_vm0, %v647_v10, %v649_v11  ;;  %s6483_s20 = smov 69   ;;  %v4703_v35 = vld [vmem:[%s6508_s29 + $0x84] ss:$8 sps:$4 sm:$0xff]   ;;  %v4705_v36 = vld [vmem:[%s6508_s29 + $0x80] ss:$8 sps:$4 sm:$0xff]   ;;  %s6511_s21 = smov 61   ;;  %v4534_v45 = vpack.i.bf16 %v5238_v26, %v5190_v7 }
  0x27   : > { %v5211_v16 = vpack.i.bf16 %v650_v14, %v648_v13  ;;  %1486 = vmatpush1.bf16.msra.mxu0 %v4687_v12  ;;  %v701_v23 = vsel %vm698_vm1, %v699_v18, %v700_v19  ;;  %v703_v24 = vsel %vm698_vm1, %v700_v19, %v702_v20  ;;  %v5264_v32 = vsel %vm645_vm0, %v649_v11, %v5250_v29  ;;  %v4706_v37 = vld [vmem:[%s6508_s29 + $0x94] ss:$8 sps:$4 sm:$0xff]   ;;  %v4708_v38 = vld [vmem:[%s6508_s29 + $0x90] ss:$8 sps:$4 sm:$0xff]   ;;  %v4709_v39 = vld [vmem:[%s6508_s29 + $0xa4] ss:$8 sps:$4 sm:$0xff]  }
  0x28   : > { %1487 = vmatprep.subr.bf16.mxu0 %v4688_v15  ;;  %v5247_v28 = vpack.i.bf16 %v703_v24, %v701_v23  ;;  %v704_v40 = vrot.slane %v5238_v26, 2  ;;  %v4711_v41 = vld [vmem:[%s6508_s29 + $0xa0] ss:$8 sps:$4 sm:$0xff]   ;;  %v4712_v42 = vld [vmem:[%s6508_s29 + $0xb4] ss:$8 sps:$4 sm:$0xff]   ;;  %v4574_v54 = vpack.i.bf16 %v5250_v29, %v5264_v32  ;;  %v752_v56 = vrot.slane %v5184_v5, 3 }
  0x29   : > { %v4714_v44 = vld [vmem:[%s6508_s29 + $0xb0] ss:$8 sps:$4 sm:$0xff]   ;;  %v4715_v46 = vld [vmem:[%s6508_s29 + $0xc4] ss:$8 sps:$4 sm:$0xff]   ;;  %v4717_v47 = vld [vmem:[%s6508_s29 + $0xc0] ss:$8 sps:$4 sm:$0xff]  }
  0x2a   : > { %4505 = vrot.lane.b32.xlu1 %v5211_v16, %s4968_s27  ;;  %4490 = vrot.lane.b32.xlu0 %v5211_v16, %s6489_s23  ;;  %v5310_v43 = vsel %vm698_vm1, %v702_v20, %v704_v40  ;;  %v4718_v48 = vld [vmem:[%s6508_s29 + $0xd4] ss:$8 sps:$4 sm:$0xff]   ;;  %v4720_v49 = vld [vmem:[%s6508_s29 + $0xd0] ss:$8 sps:$4 sm:$0xff]   ;;  %v753_v57 = vrot.slane %v5187_v6, 3  ;;  %v755_v58 = vrot.slane %v5190_v7, 3 }
  0x2b   : > { %1488 = vmatpush1.bf16.msra.mxu0 %v4690_v17  ;;  %v4721_v50 = vld [vmem:[%s6508_s29 + $0xe4] ss:$8 sps:$4 sm:$0xff]   ;;  %v4723_v51 = vld [vmem:[%s6508_s29 + $0xe0] ss:$8 sps:$4 sm:$0xff]   ;;  %v4724_v52 = vld [vmem:[%s6508_s29 + $0xf4] ss:$8 sps:$4 sm:$0xff]  }
  0x2c   : > { %1489 = vmatprep.subr.bf16.mxu0 %v4691_v21  ;;  %v4726_v53 = vld [vmem:[%s6508_s29 + $0xf0] ss:$8 sps:$4 sm:$0xff]   ;;  %v4729_v55 = vld [vmem:[%s6508_s29 + $0x104] ss:$8 sps:$4 sm:$0xff]   ;;  %v754_v59 = vsel %vm751_vm2, %v752_v56, %v753_v57  ;;  %v756_v60 = vsel %vm751_vm2, %v753_v57, %v755_v58  ;;  %v757_v62 = vrot.slane %v5238_v26, 3 }
  0x2d   : > { %v4609_v61 = vpack.i.bf16 %v756_v60, %v754_v59  ;;  %v4735_v59 = vld [vmem:[%s6508_s29 + $0x124] ss:$8 sps:$4 sm:$0xff]  }
  0x2e   : > { %4510 = vrot.lane.b32.xlu1 %v5211_v16, %s6487_s25  ;;  %4495 = vrot.lane.b32.xlu0 %v5211_v16, %s4971_s26  ;;  %s4977_s25 = smov 22   ;;  %v758_v63 = vsel %vm751_vm2, %v755_v58, %v757_v62  ;;  %v4730_v58 = vld [vmem:[%s6508_s29 + $0x110] ss:$8 sps:$4 sm:$0xff]  }
  0x2f   : > { %1490 = vmatpush1.bf16.msra.mxu0 %v4693_v22 }
  0x30   : > { %1491 = vmatprep.subr.bf16.mxu0 %v4694_v25 }
  0x32   : > { %4515 = vrot.lane.b32.xlu1 %v5211_v16, %s6481_s2  ;;  %4500 = vrot.lane.b32.xlu0 %v5194_v8, %s6483_s20  ;;  %s6485_s2 = smov 112   ;;  %s6484_s20 = smov 92  }
  0x33   : > { %1492 = vmatpush1.bf16.msra.mxu0 %v4696_v27 }
  0x34   : > { %1493 = vmatprep.subr.bf16.mxu0 %v4697_v30 }
  0x36   : > { %4525 = vrot.lane.b32.xlu1 %v5247_v28, %s6485_s2  ;;  %4520 = vrot.lane.b32.xlu0 %v5194_v8, %s6484_s20  ;;  %s4976_s20 = smov 127   ;;  %s4978_s2 = smov 45  }
  0x37   : > { %1494 = vmatpush1.bf16.msra.mxu0 %v4699_v31 }
  0x38   : > { %1495 = vmatprep.subr.bf16.mxu0 %v4700_v33 }
  0x3a   : > { %666 = vrot.lane.b32.xlu1 %v5264_v32, %s4971_s26  ;;  %657 = vrot.lane.b32.xlu0 %v5264_v32, %s6489_s23  ;;  %s6513_s26 = smov 84   ;;  %s4982_s23 = smov 7  }
  0x3b   : > { %1496 = vmatpush1.bf16.msra.mxu0 %v4702_v34 }
  0x3c   : > { %1497 = vmatprep.subr.bf16.mxu0 %v4703_v35 }
  0x3e   : > { %675 = vrot.lane.b32.xlu1 %v5264_v32, %s4968_s27  ;;  %612 = vrot.lane.b32.xlu0 %v5190_v7, %s6510_s22  ;;  %s6512_s27 = smov 46   ;;  %s6493_s22 = smov 68  }
  0x3f   : > { %1498 = vmatpush1.bf16.msra.mxu0 %v4705_v36 }
  0x40   : > { %1499 = vmatprep.subr.bf16.mxu0 %v4706_v37 }
  0x42   : > { %684 = vrot.lane.b32.xlu1 %v5264_v32, %s6511_s21  ;;  %621 = vrot.lane.b32.xlu0 %v5190_v7, %s6512_s27  ;;  %s6515_s21 = smov 112   ;;  %s6516_s27 = smov 92  }
  0x43   : > { %1500 = vmatpush1.bf16.msra.mxu0 %v4708_v38 }
  0x44   : > { %1501 = vmatprep.subr.bf16.mxu0 %v4709_v39 }
  0x46   : > { %693 = vrot.lane.b32.xlu1 %v5264_v32, %s6513_s26  ;;  %630 = vrot.lane.b32.xlu0 %v5190_v7, %s6514_s24  ;;  %s6490_s24 = smov 104  }
  0x47   : > { %1502 = vmatpush1.bf16.msra.mxu0 %v4711_v41 }
  0x48   : > { %1503 = vmatprep.subr.bf16.mxu0 %v4712_v42 }
  0x4a   : > { %710 = vrot.lane.b32.xlu1 %v5310_v43, %s6515_s21  ;;  %639 = vrot.lane.b32.xlu0 %v5190_v7, %s6516_s27  ;;  %s4984_s27 = smov 76  }
  0x4b   : > { %1504 = vmatpush1.bf16.msra.mxu0 %v4714_v44 }
  0x4c   : > { %1505 = vmatprep.subr.bf16.mxu0 %v4715_v46 }
  0x4e   : > { %4535 = vrot.lane.b32.xlu1 %v4534_v45, %s4976_s20  ;;  %4530 = vrot.lane.b32.xlu0 %v5194_v8, %s4976_s20  ;;  %s6492_s20 = smov 96  }
  0x4f   : > { %1506 = vmatpush1.bf16.msra.mxu0 %v4717_v47 }
  0x50   : > { %1507 = vmatprep.subr.bf16.mxu0 %v4718_v48 }
  0x52   : > { %4545 = vrot.lane.b32.xlu1 %v4534_v45, %s4977_s25  ;;  %4540 = vrot.lane.b32.xlu0 %v5194_v8, %s4977_s25  ;;  %s4985_s25 = smov 53  }
  0x53   : > { %1508 = vmatpush1.bf16.msra.mxu0 %v4720_v49 }
  0x54   : > { %1509 = vmatprep.subr.bf16.mxu0 %v4721_v50 }
  0x56   : > { %4555 = vrot.lane.b32.xlu1 %v4534_v45, %s4978_s2  ;;  %4550 = vrot.lane.b32.xlu0 %v5194_v8, %s4978_s2  ;;  %s4981_s2 = smov 119  }
  0x57   : > { %1510 = vmatpush1.bf16.msra.mxu0 %v4723_v51  ;;  %v4727_v51 = vld [vmem:[%s6508_s29 + $0x100] ss:$8 sps:$4 sm:$0xff]  }
  0x58   : > { %1511 = vmatprep.subr.bf16.mxu0 %v4724_v52 }
  0x5a   : > { %4565 = vrot.lane.b32.xlu1 %v4534_v45, %s6493_s22  ;;  %4560 = vrot.lane.b32.xlu0 %v5194_v8, %s6493_s22  ;;  %s4995_s22 = smov 40  }
  0x5b   : > { %1512 = vmatpush1.bf16.msra.mxu0 %v4726_v53 }
  0x5c   : > { %1532 = vmatprep.subr.bf16.mxu0 %v4729_v55  ;;  %v4732_v55 = vld [vmem:[%s6508_s29 + $0x114] ss:$8 sps:$4 sm:$0xff]  }
  0x5e   : > { %4575 = vrot.lane.b32.xlu1 %v4574_v54, %s6492_s20  ;;  %4570 = vrot.lane.b32.xlu0 %v5211_v16, %s6492_s20  ;;  %s5010_s20 = smov 62  }
  0x62   : > { %4585 = vrot.lane.b32.xlu1 %v5211_v16, %s4981_s2  ;;  %4580 = vrot.lane.b32.xlu0 %v5247_v28, %s4982_s23 }
  0x66   : > { %4595 = vrot.lane.b32.xlu1 %v5247_v28, %s4983_s0  ;;  %4590 = vrot.lane.b32.xlu0 %v4574_v54, %s4981_s2  ;;  %s4988_s2 = smov 37  }
  0x6a   : > { %4605 = vrot.lane.b32.xlu1 %v5247_v28, %s4984_s27  ;;  %4600 = vrot.lane.b32.xlu0 %v5247_v28, %s4985_s25 }
  0x6e   : > { %719 = vrot.lane.b32.xlu1 %v5310_v43, %s4982_s23  ;;  %4610 = vrot.lane.b32.xlu0 %v4609_v61, %s6490_s24  ;;  %s4989_s23 = smov 60   ;;  %v4901_v61 = vld [vmem:[%s5178_s28 + $0x10] sm:$0xff] }
  0x72   : > { %737 = vrot.lane.b32.xlu1 %v5310_v43, %s4985_s25  ;;  %728 = vrot.lane.b32.xlu0 %v5310_v43, %s4983_s0  ;;  %s6517_s25 = sld [smem:[#allocation13_spill]]  ;;  %s4993_s0 = smov 126  }
  0x76   : > { %763 = vrot.lane.b32.xlu1 %v758_v63, %s6490_s24  ;;  %746 = vrot.lane.b32.xlu0 %v5310_v43, %s4984_s27  ;;  %s6519_s24 = smov 68   ;;  %s5006_s27 = smov 64  }
  0x7a   : > { %904 = vrot.lane.b32.xlu1 %v5264_v32, %s4987_s19  ;;  %4615 = vrot.lane.b32.xlu0 %v5211_v16, %s4987_s19 }
  0x7e   : > { %916 = vrot.lane.b32.xlu1 %v5264_v32, %s4988_s2  ;;  %4620 = vrot.lane.b32.xlu0 %v5211_v16, %s4988_s2 }
  0x82   : > { %928 = vrot.lane.b32.xlu1 %v5264_v32, %s4989_s23  ;;  %4625 = vrot.lane.b32.xlu0 %v5211_v16, %s4989_s23 }
  0x86   : > { %906 = vrot.lane.b32.xlu0 %v5250_v29, %s4987_s19  ;;  %918 = vrot.lane.b32.xlu1 %v5250_v29, %s4988_s2  ;;  %s6518_s2 = sld [smem:[#allocation14_spill]]  ;;  %s4994_s19 = smov 42  }
  0x8a   : > { %930 = vrot.lane.b32.xlu0 %v5250_v29, %s4989_s23  ;;  %s4996_s23 = smov 110  }
  0x98   : > { %v4486_v0 = vpop.permute.xlu0 %4485  ;;  %v4481_v1 = vpop.permute.xlu1 %4480 }
  0x99   : > { %v4483_v4 = vunpack.i.h.bf16 %v4481_v1  ;;  %v4482_v7 = vunpack.i.l.bf16 %v4481_v1  ;;  %v4488_v18 = vunpack.i.h.bf16 %v4486_v0  ;;  %v4487_v19 = vunpack.i.l.bf16 %v4486_v0  ;;  %v4733_v1 = vld [vmem:[%s6508_s29 + $0x120] ss:$8 sps:$4 sm:$0xff]  }
  0x9b   : > { %v770_v24 = vsel %vm768_vm5, %v5187_v6, %v4483_v4  ;;  %v769_v25 = vsel %vm768_vm5, %v5184_v5, %v4482_v7 }
  0x9c   : > { %v4506_v2 = vpop.permute.xlu1 %4505  ;;  %v4491_v3 = vpop.permute.xlu0 %4490  ;;  %v773_v34 = vsel %vm772_vm7, %v769_v25, %v4487_v19  ;;  %v774_v35 = vsel %vm772_vm7, %v770_v24, %v4488_v18  ;;  %v4744_v19 = vld [vmem:[%s6508_s29 + $0x154] ss:$8 sps:$4 sm:$0xff]   ;;  %v4742_v25 = vld [vmem:[%s6508_s29 + $0x150] ss:$8 sps:$4 sm:$0xff]  }
  0x9d   : > { %v4493_v10 = vunpack.i.h.bf16 %v4491_v3  ;;  %v4492_v11 = vunpack.i.l.bf16 %v4491_v3  ;;  %v4508_v14 = vunpack.i.h.bf16 %v4506_v2  ;;  %v4507_v15 = vunpack.i.l.bf16 %v4506_v2  ;;  %v4738_v2 = vld [vmem:[%s6508_s29 + $0x134] ss:$8 sps:$4 sm:$0xff]  }
  0xa0   : > { %v4511_v8 = vpop.permute.xlu1 %4510  ;;  %v4496_v9 = vpop.permute.xlu0 %4495 }
  0xa1   : > { %v4498_v12 = vunpack.i.h.bf16 %v4496_v9  ;;  %v4497_v13 = vunpack.i.l.bf16 %v4496_v9  ;;  %v4513_v26 = vunpack.i.h.bf16 %v4511_v8  ;;  %v4512_v27 = vunpack.i.l.bf16 %v4511_v8  ;;  %v4736_v9 = vld [vmem:[%s6508_s29 + $0x130] ss:$8 sps:$4 sm:$0xff]  }
  0xa3   : > { %v789_v16 = vsel %vm788_vm3, %v4492_v11, %v4497_v13  ;;  %v790_v17 = vsel %vm788_vm3, %v4493_v10, %v4498_v12 }
  0xa4   : > { %v4516_v20 = vpop.permute.xlu1 %4515  ;;  %v4501_v21 = vpop.permute.xlu0 %4500  ;;  %v793_v22 = vsel %vm792_vm4, %v789_v16, %v4507_v15  ;;  %v794_v23 = vsel %vm792_vm4, %v790_v17, %v4508_v14  ;;  %v4739_v16 = vld [vmem:[%s6508_s29 + $0x140] ss:$8 sps:$4 sm:$0xff]  }
  0xa5   : > { %v4518_v28 = vunpack.i.h.bf16 %v4516_v20  ;;  %v4517_v29 = vunpack.i.l.bf16 %v4516_v20  ;;  %v4503_v30 = vunpack.i.h.bf16 %v4501_v21  ;;  %v4502_v31 = vunpack.i.l.bf16 %v4501_v21 }
  0xa6   : > { %v797_v32 = vsel %vm796_vm6, %v793_v22, %v4512_v27  ;;  %v798_v33 = vsel %vm796_vm6, %v794_v23, %v4513_v26  ;;  %v4747_v26 = vld [vmem:[%s6508_s29 + $0x164] ss:$8 sps:$4 sm:$0xff]  }
  0xa7   : > { %v778_v40 = vsel %vm776_vm8, %v774_v35, %v4503_v30  ;;  %v777_v41 = vsel %vm776_vm8, %v773_v34, %v4502_v31  ;;  %v801_v42 = vsel %vm800_vm10, %v797_v32, %v4517_v29  ;;  %v802_v43 = vsel %vm800_vm10, %v798_v33, %v4518_v28  ;;  %v4745_v29 = vld [vmem:[%s6508_s29 + $0x160] ss:$8 sps:$4 sm:$0xff]   ;;  %v4750_v30 = vld [vmem:[%s6508_s29 + $0x174] ss:$8 sps:$4 sm:$0xff]   ;;  %v4748_v33 = vld [vmem:[%s6508_s29 + $0x170] ss:$8 sps:$4 sm:$0xff]  }
  0xa8   : > { %v5398_v6 = vpop.permute.xlu1 %4525  ;;  %v4521_v36 = vpop.permute.xlu0 %4520  ;;  %v4753_v34 = vld [vmem:[%s6508_s29 + $0x184] ss:$8 sps:$4 sm:$0xff]  }
  0xa9   : > { %v4528_v5 = vunpack.i.h.bf16 %v5398_v6  ;;  %v4527_v37 = vunpack.i.l.bf16 %v5398_v6  ;;  %v4523_v38 = vunpack.i.h.bf16 %v4521_v36  ;;  %v4522_v39 = vunpack.i.l.bf16 %v4521_v36 }
  0xab   : > { %v781_v44 = vsel %vm780_vm9, %v777_v41, %v4522_v39  ;;  %v782_v45 = vsel %vm780_vm9, %v778_v40, %v4523_v38  ;;  %v805_v46 = vsel %vm6491_vm11, %v801_v42, %v4527_v37  ;;  %v806_v47 = vsel %vm6491_vm11, %v802_v43, %v4528_v5  ;;  %v4751_v42 = vld [vmem:[%s6508_s29 + $0x180] ss:$8 sps:$4 sm:$0xff]   ;;  %v4756_v43 = vld [vmem:[%s6508_s29 + $0x194] ss:$8 sps:$4 sm:$0xff]  }
  0xac   : > { %v667_v48 = vpop.permute.xlu1 %666  ;;  %v658_v49 = vpop.permute.xlu0 %657  ;;  %v997_v50 = vpack.c.bf16 %v806_v47, %v805_v46  ;;  %v785_v52 = vsel %vm784_vm12, %v781_v44, %v4492_v11  ;;  %v786_v53 = vsel %vm784_vm12, %v782_v45, %v4493_v10  ;;  %v4741_v11 = vld [vmem:[%s6508_s29 + $0x144] ss:$8 sps:$4 sm:$0xff]  }
  0xad   : > { %v996_v54 = vpack.c.bf16 %v786_v53, %v785_v52  ;;  %v791_v60 = vsel %vm788_vm3, %v658_v49, %v667_v48  ;;  %v4754_v52 = vld [vmem:[%s6508_s29 + $0x190] ss:$8 sps:$4 sm:$0xff]  }
  0xae   : > { %1513 = vmatprep.mubr.bf16.mxu0 %v997_v50 }
  0xaf   : > { %1514 = vmatmul.mubr.bf16.vlgmr.msra.gmra.mrb[0].mxu0 %v996_v54 }
  0xb0   : > { %1533 = vmatpush1.bf16.msra.mxu0 %v4727_v51  ;;  %v676_v56 = vpop.permute.xlu1 %675  ;;  %v613_v57 = vpop.permute.xlu0 %612 }
  0xb1   : > { %1534 = vmatprep.subr.bf16.mxu0 %v4732_v55  ;;  %v771_v62 = vsel %vm768_vm5, %v4901_v61, %v613_v57  ;;  %v795_v3 = vsel %vm792_vm4, %v791_v60, %v676_v56  ;;  %v4759_v56 = vld [vmem:[%s6508_s29 + $0x1a4] ss:$8 sps:$4 sm:$0xff]  }
  0xb4   : > { %1535 = vmatpush1.bf16.msra.mxu0 %v4730_v58  ;;  %v685_v63 = vpop.permute.xlu1 %684  ;;  %v622_v0 = vpop.permute.xlu0 %621 }
  0xb5   : > { %1536 = vmatprep.subr.bf16.mxu0 %v4735_v59  ;;  %v775_v4 = vsel %vm772_vm7, %v771_v62, %v622_v0  ;;  %v799_v10 = vsel %vm796_vm6, %v795_v3, %v685_v63 }
  0xb8   : > { %1537 = vmatpush1.bf16.msra.mxu0 %v4733_v1  ;;  %v694_v7 = vpop.permute.xlu1 %693  ;;  %v631_v8 = vpop.permute.xlu0 %630  ;;  %v4757_v1 = vld [vmem:[%s6508_s29 + $0x1a0] ss:$8 sps:$4 sm:$0xff]  }
  0xb9   : > { %1538 = vmatprep.subr.bf16.mxu0 %v4738_v2  ;;  %v779_v12 = vsel %vm776_vm8, %v775_v4, %v631_v8  ;;  %v803_v13 = vsel %vm800_vm10, %v799_v10, %v694_v7  ;;  %v4762_v8 = vld [vmem:[%s6508_s29 + $0x1b4] ss:$8 sps:$4 sm:$0xff]  }
  0xbc   : > { %1539 = vmatpush1.bf16.msra.mxu0 %v4736_v9  ;;  %v5448_v14 = vpop.permute.xlu1 %710  ;;  %v640_v15 = vpop.permute.xlu0 %639 }
  0xbd   : > { %v807_v17 = vsel %vm6491_vm11, %v803_v13, %v5448_v14  ;;  %v783_v18 = vsel %vm780_vm9, %v779_v12, %v640_v15  ;;  %1540 = vmatprep.subr.bf16.mxu0 %v4741_v11  ;;  %vm820_vm11 = vcmask 654336  }
  0xbe   : > { %v1002_v20 = vpack.c.bf16 %v807_v17, %v807_v17  ;;  %v787_v21 = vsel %vm784_vm12, %v783_v18, %v658_v49 }
  0xbf   : > { %v1001_v22 = vpack.c.bf16 %v787_v21, %v787_v21 }
  0xc0   : > { %1541 = vmatpush1.bf16.msra.mxu0 %v4739_v16  ;;  %v5460_v23 = vpop.permute.xlu1 %4535  ;;  %v4531_v24 = vpop.permute.xlu0 %4530  ;;  %1523 = vmatprep.mubr.bf16.mxu0 %v1002_v20  ;;  %v4760_v20 = vld [vmem:[%s6508_s29 + $0x1b0] ss:$8 sps:$4 sm:$0xff]  }
  0xc1   : > { %1524 = vmatmul.mubr.bf16.gmra.mrb[4].mxu0 %v1001_v22  ;;  %1542 = vmatprep.subr.bf16.mxu0 %v4744_v19  ;;  %v4533_v35 = vunpack.i.h.bf16 %v4531_v24  ;;  %v4532_v36 = vunpack.i.l.bf16 %v4531_v24  ;;  %v4537_v46 = vunpack.i.l.bf16 %v5460_v23  ;;  %v4538_v16 = vunpack.i.h.bf16 %v5460_v23  ;;  %v4765_v24 = vld [vmem:[%s6508_s29 + $0x1c4] ss:$8 sps:$4 sm:$0xff]  }
  0xc4   : > { %1543 = vmatpush1.bf16.msra.mxu0 %v4742_v25  ;;  %v5468_v27 = vpop.permute.xlu1 %4545  ;;  %v4541_v28 = vpop.permute.xlu0 %4540 }
  0xc5   : > { %1544 = vmatprep.subr.bf16.mxu0 %v4747_v26  ;;  %v4543_v38 = vunpack.i.h.bf16 %v4541_v28  ;;  %v4542_v39 = vunpack.i.l.bf16 %v4541_v28  ;;  %v4547_v47 = vunpack.i.l.bf16 %v5468_v27  ;;  %v4548_v17 = vunpack.i.h.bf16 %v5468_v27 }
  0xc7   : > { %v936_v48 = vsel %vm768_vm5, %v4532_v36, %v4542_v39  ;;  %v937_v49 = vsel %vm768_vm5, %v4533_v35, %v4543_v38  ;;  %v938_v61 = vsel %vm768_vm5, %v4537_v46, %v4547_v47  ;;  %v4766_v47 = vld [vmem:[%s6508_s29 + $0x1d0] ss:$8 sps:$4 sm:$0xff]  }
  0xc8   : > { %1545 = vmatpush1.bf16.msra.mxu0 %v4745_v29  ;;  %v5476_v31 = vpop.permute.xlu1 %4555  ;;  %v4551_v32 = vpop.permute.xlu0 %4550  ;;  %v939_v29 = vsel %vm768_vm5, %v4538_v16, %v4548_v17 }
  0xc9   : > { %1546 = vmatprep.subr.bf16.mxu0 %v4750_v30  ;;  %v4553_v44 = vunpack.i.h.bf16 %v4551_v32  ;;  %v4552_v45 = vunpack.i.l.bf16 %v4551_v32  ;;  %v4557_v53 = vunpack.i.l.bf16 %v5476_v31  ;;  %v4558_v27 = vunpack.i.h.bf16 %v5476_v31  ;;  %v4768_v31 = vld [vmem:[%s6508_s29 + $0x1d4] ss:$8 sps:$4 sm:$0xff]  }
  0xcb   : > { %v940_v57 = vsel %vm772_vm7, %v936_v48, %v4552_v45  ;;  %v941_v58 = vsel %vm772_vm7, %v937_v49, %v4553_v44  ;;  %v942_v9 = vsel %vm772_vm7, %v938_v61, %v4557_v53  ;;  %v943_v39 = vsel %vm772_vm7, %v939_v29, %v4558_v27 }
  0xcc   : > { %1547 = vmatpush1.bf16.msra.mxu0 %v4748_v33  ;;  %v5484_v40 = vpop.permute.xlu1 %4565  ;;  %v4561_v41 = vpop.permute.xlu0 %4560 }
  0xcd   : > { %1548 = vmatprep.subr.bf16.mxu0 %v4753_v34  ;;  %v4563_v54 = vunpack.i.h.bf16 %v4561_v41  ;;  %v4562_v55 = vunpack.i.l.bf16 %v4561_v41  ;;  %v4567_v62 = vunpack.i.l.bf16 %v5484_v40  ;;  %v4763_v34 = vld [vmem:[%s6508_s29 + $0x1c0] ss:$8 sps:$4 sm:$0xff]   ;;  %v4568_v35 = vunpack.i.h.bf16 %v5484_v40 }
  0xcf   : > { %v944_v2 = vsel %vm776_vm8, %v940_v57, %v4562_v55  ;;  %v945_v3 = vsel %vm776_vm8, %v941_v58, %v4563_v54  ;;  %v946_v21 = vsel %vm776_vm8, %v942_v9, %v4567_v62 }
  0xd0   : > { %1549 = vmatpush1.bf16.msra.mxu0 %v4751_v42  ;;  %v5496_v50 = vpop.permute.xlu1 %4575  ;;  %v4571_v51 = vpop.permute.xlu0 %4570 }
  0xd1   : > { %1550 = vmatprep.subr.bf16.mxu0 %v4756_v43  ;;  %v4573_v59 = vunpack.i.h.bf16 %v4571_v51  ;;  %v4572_v60 = vunpack.i.l.bf16 %v4571_v51  ;;  %v4577_v10 = vunpack.i.l.bf16 %v5496_v50  ;;  %v4578_v41 = vunpack.i.h.bf16 %v5496_v50  ;;  %v4771_v50 = vld [vmem:[%s6508_s29 + $0x1e4] ss:$8 sps:$4 sm:$0xff]  }
  0xd2   : > { %v947_v51 = vsel %vm776_vm8, %v943_v39, %v4568_v35  ;;  %vm824_vm8 = vcmask 850944  }
  0xd3   : > { %v948_v11 = vsel %vm780_vm9, %v944_v2, %v4572_v60  ;;  %v949_v12 = vsel %vm780_vm9, %v945_v3, %v4573_v59  ;;  %v950_v23 = vsel %vm780_vm9, %v946_v21, %v4577_v10  ;;  %v951_v54 = vsel %vm780_vm9, %v947_v51, %v4578_v41  ;;  %v4769_v60 = vld [vmem:[%s6508_s29 + $0x1e0] ss:$8 sps:$4 sm:$0xff]  }
  0xd4   : > { %1551 = vmatpush1.bf16.msra.mxu0 %v4754_v52  ;;  %v5509_v63 = vpop.permute.xlu1 %4585  ;;  %v5511_v0 = vpop.permute.xlu0 %4580 }
  0xd5   : > { %v4588_v4 = vunpack.i.h.bf16 %v5509_v63  ;;  %v4587_v7 = vunpack.i.l.bf16 %v5509_v63  ;;  %1552 = vmatprep.subr.bf16.mxu0 %v4759_v56  ;;  %v4583_v43 = vunpack.i.h.bf16 %v5511_v0  ;;  %v4582_v44 = vunpack.i.l.bf16 %v5511_v0 }
  0xd7   : > { %v952_v13 = vsel %vm784_vm12, %v948_v11, %v4587_v7  ;;  %v953_v15 = vsel %vm784_vm12, %v949_v12, %v4588_v4  ;;  %v810_v55 = vsel %vm808_vm13, %v4528_v5, %v4583_v43  ;;  %v809_v56 = vsel %vm808_vm13, %v4527_v37, %v4582_v44  ;;  %v4774_v37 = vld [vmem:[%s6508_s29 + $0x1f4] ss:$8 sps:$4 sm:$0xff]   ;;  %v4772_v11 = vld [vmem:[%s6508_s29 + $0x1f0] ss:$8 sps:$4 sm:$0xff]  }
  0xd8   : > { %1553 = vmatpush1.bf16.msra.mxu0 %v4757_v1  ;;  %v4596_v18 = vpop.permute.xlu1 %4595  ;;  %v5535_v19 = vpop.permute.xlu0 %4590  ;;  %v976_v25 = vrot.slane %v952_v13, 3  ;;  %v977_v26 = vrot.slane %v953_v15, 3  ;;  %v4777_v15 = vld [vmem:[%s6508_s29 + $0x204] ss:$8 sps:$4 sm:$0xff]  }
  0xd9   : > { %v4592_v22 = vunpack.i.l.bf16 %v5535_v19  ;;  %1554 = vmatprep.subr.bf16.mxu0 %v4762_v8  ;;  %v4593_v45 = vunpack.i.h.bf16 %v5535_v19  ;;  %v4598_v48 = vunpack.i.h.bf16 %v4596_v18  ;;  %v4597_v49 = vunpack.i.l.bf16 %v4596_v18 }
  0xda   : > { %v978_v36 = vsel %vm751_vm2, %v976_v25, %v977_v26 }
  0xdb   : > { %v5550_v28 = vsel %vm784_vm12, %v950_v23, %v4592_v22  ;;  %v955_v57 = vsel %vm784_vm12, %v951_v54, %v4593_v45  ;;  %v813_v61 = vsel %vm812_vm14, %v809_v56, %v4597_v49  ;;  %v814_v5 = vsel %vm812_vm14, %v810_v55, %v4598_v48  ;;  %v4775_v23 = vld [vmem:[%s6508_s29 + $0x200] ss:$8 sps:$4 sm:$0xff]   ;;  %v1080_v56 = vld [vmem:[%s6508_s29 + $0x250] sm:$0xff] }
  0xdc   : > { %v982_v30 = vrot.slane %v5550_v28, 3  ;;  %1555 = vmatpush1.bf16.msra.mxu0 %v4760_v20  ;;  %v4606_v32 = vpop.permute.xlu1 %4605  ;;  %v4601_v33 = vpop.permute.xlu0 %4600  ;;  %v986_v8 = vrot.slane %v955_v57, 3  ;;  %v4990_v48 = vmov 0  }
  0xdd   : > { %1556 = vmatprep.subr.bf16.mxu0 %v4765_v24  ;;  %v4603_v52 = vunpack.i.h.bf16 %v4601_v33  ;;  %v4602_v53 = vunpack.i.l.bf16 %v4601_v33  ;;  %v4608_v62 = vunpack.i.h.bf16 %v4606_v32  ;;  %v4607_v6 = vunpack.i.l.bf16 %v4606_v32  ;;  %v4778_v32 = vld [vmem:[%s6508_s29 + $0x210] ss:$8 sps:$4 sm:$0xff]   ;;  %v4783_v33 = vld [vmem:[%s6508_s29 + $0x224] ss:$8 sps:$4 sm:$0xff]  }
  0xde   : > { %v983_v38 = vsel %vm751_vm2, %v977_v26, %v982_v30  ;;  %v987_v21 = vsel %vm751_vm2, %v982_v30, %v986_v8 }
  0xdf   : > { %v999_v42 = vpack.c.bf16 %v983_v38, %v978_v36  ;;  %v817_v0 = vsel %vm816_vm15, %v813_v61, %v4602_v53  ;;  %v818_v1 = vsel %vm816_vm15, %v814_v5, %v4603_v52  ;;  %v1004_v29 = vpack.c.bf16 %v987_v21, %v987_v21  ;;  %v4781_v36 = vld [vmem:[%s6508_s29 + $0x220] ss:$8 sps:$4 sm:$0xff]   ;;  %v4789_v52 = vld [vmem:[%s6508_s29 + $0x244] ss:$8 sps:$4 sm:$0xff]  }
  0xe0   : > { %1557 = vmatpush1.bf16.msra.mxu0 %v4763_v34  ;;  %v720_v46 = vpop.permute.xlu1 %719  ;;  %v4611_v40 = vpop.permute.xlu0 %4610  ;;  %v821_v12 = vsel %vm820_vm11, %v817_v0, %v4607_v6  ;;  %v822_v13 = vsel %vm820_vm11, %v818_v1, %v4608_v62  ;;  %v3854_v61 = vcombine.low %v1080_v56, %v1080_v56 }
  0xe1   : > { %1564 = vmatprep.mubr.bf16.mxu0 %v999_v42  ;;  %1558 = vmatprep.subr.bf16.mxu0 %v4768_v31  ;;  %v4613_v2 = vunpack.i.h.bf16 %v4611_v40  ;;  %v4612_v3 = vunpack.i.l.bf16 %v4611_v40  ;;  %v811_v16 = vsel %vm808_vm13, %v5448_v14, %v720_v46  ;;  %v4780_v14 = vld [vmem:[%s6508_s29 + $0x214] ss:$8 sps:$4 sm:$0xff]  }
  0xe2   : > { %v4786_v42 = vld [vmem:[%s6508_s29 + $0x234] ss:$8 sps:$4 sm:$0xff]  }
  0xe3   : > { %v825_v17 = vsel %vm824_vm8, %v821_v12, %v4612_v3  ;;  %v826_v18 = vsel %vm824_vm8, %v822_v13, %v4613_v2  ;;  %v4991_v12 = vmov 0.0   ;;  %v1083_v13 = vlaneseq }
  0xe4   : > { %1559 = vmatpush1.bf16.msra.mxu0 %v4766_v47  ;;  %v738_v58 = vpop.permute.xlu1 %737  ;;  %v729_v59 = vpop.permute.xlu0 %728  ;;  %v998_v25 = vpack.c.bf16 %v826_v18, %v825_v17  ;;  %v4784_v47 = vld [vmem:[%s6508_s29 + $0x230] ss:$8 sps:$4 sm:$0xff]   ;;  %1706 = vmatprep.mubr.f32.mxu1 %v4991_v12  ;;  %v1081_v17 = vld [vmem:[%s6517_s25] sm:$0x3]  ;;  %s5007_s25 = smov 122  }
  0xe5   : > { %1560 = vmatprep.subr.bf16.mxu0 %v4771_v50  ;;  %v815_v20 = vsel %vm812_vm14, %v811_v16, %v729_v59 }
  0xe6   : > { %v819_v27 = vsel %vm816_vm15, %v815_v20, %v738_v58  ;;  %v4787_v58 = vld [vmem:[%s6508_s29 + $0x240] ss:$8 sps:$4 sm:$0xff]   ;;  %vm1474_vm15 = vcmask 1043456  }
  0xe7   : > { %v1476_v1 = vsel %vm1474_vm15, %v3854_v61, 0  ;;  %v1820_v61 = vld [vmem:[%s6456_s5 + $0x60] sm:$0xff] }
  0xe8   : > { %1561 = vmatpush1.bf16.msra.mxu0 %v4769_v60  ;;  %v764_v9 = vpop.permute.xlu1 %763  ;;  %v747_v10 = vpop.permute.xlu0 %746  ;;  %v3855_v60 = vcombine.high %v1080_v56, %v1080_v56  ;;  %v1815_v56 = vld [vmem:[%s6456_s5 + $0x38] sm:$0xff] }
  0xe9   : > { %1562 = vmatprep.subr.bf16.mxu0 %v4774_v37  ;;  %v823_v28 = vsel %vm820_vm11, %v819_v27, %v747_v10 }
  0xea   : > { %v827_v34 = vsel %vm824_vm8, %v823_v28, %v764_v9 }
  0xeb   : > { %v1003_v41 = vpack.c.bf16 %v827_v34, %v827_v34 }
  0xec   : > { %1563 = vmatpush1.bf16.msra.mxu0 %v4772_v11  ;;  %v4616_v24 = vpop.permute.xlu0 %4615  ;;  %v905_v26 = vpop.permute.xlu1 %904 }
  0xed   : > { %1583 = vmatprep.subr.bf16.mxu0 %v4777_v15  ;;  %v4618_v38 = vunpack.i.h.bf16 %v4616_v24  ;;  %v4617_v39 = vunpack.i.l.bf16 %v4616_v24  ;;  %v958_v63 = vsel %vm788_vm3, %v4592_v22, %v905_v26  ;;  %v1084_v15 = vshrl.u32 %v1083_v13, 7 }
  0xef   : > { %1565 = vmatmul.mubr.bf16.vlgmr.msra.gmra.mrb[0].mxu0 %v998_v25  ;;  %v957_v49 = vsel %vm788_vm3, %v4588_v4, %v4618_v38  ;;  %v956_v50 = vsel %vm788_vm3, %v4587_v7, %v4617_v39  ;;  %v1085_v16 = vsub.s32 0, %v1084_v15  ;;  %v1089_v18 = vsub.s32 1, %v1084_v15  ;;  %v1634_v39 = vld [vmem:[%s6518_s2] sm:$0xff] }
  0xf0   : > { %1574 = vmatprep.mubr.bf16.mxu0 %v1004_v29  ;;  %1584 = vmatpush1.bf16.msra.mxu0 %v4775_v23  ;;  %v4621_v30 = vpop.permute.xlu0 %4620  ;;  %v917_v31 = vpop.permute.xlu1 %916 }
  0xf1   : > { %1585 = vmatprep.subr.bf16.mxu0 %v4780_v14  ;;  %v4623_v43 = vunpack.i.h.bf16 %v4621_v30  ;;  %v4622_v44 = vunpack.i.l.bf16 %v4621_v30  ;;  %v962_v57 = vsel %vm792_vm4, %v958_v63, %v917_v31  ;;  %v1086_v20 = vrot.slane %v1081_v17, %v1085_v16 }
  0xf2   : > { %v1090_v24 = vrot.slane %v1081_v17, %v1089_v18  ;;  %v1909_v18 = vld [vmem:[%s6457_s6 + $0x10] sm:$0xff] }
  0xf3   : > { %v960_v53 = vsel %vm792_vm4, %v956_v50, %v4622_v44  ;;  %v961_v54 = vsel %vm792_vm4, %v957_v49, %v4623_v43  ;;  %v1809_v43 = vld [vmem:[%s6456_s5 + $0x8] sm:$0xff]  ;;  %v1719_v44 = vld [vmem:[%s6455_s4] sm:$0xff]  ;;  %v1811_v49 = vld [vmem:[%s6456_s5 + $0x18] sm:$0xff] }
  0xf4   : > { %1586 = vmatpush1.bf16.msra.mxu0 %v4778_v32  ;;  %v4626_v35 = vpop.permute.xlu0 %4625  ;;  %v929_v51 = vpop.permute.xlu1 %928  ;;  %v1720_v50 = vld [vmem:[%s6455_s4 + $0x8] sm:$0xf] }
  0xf5   : > { %1587 = vmatprep.subr.bf16.mxu0 %v4783_v33  ;;  %v4628_v46 = vunpack.i.h.bf16 %v4626_v35  ;;  %v4627_v40 = vunpack.i.l.bf16 %v4626_v35  ;;  %v966_v59 = vsel %vm796_vm6, %v962_v57, %v929_v51 }
  0xf6   : > { %v984_v37 = vrot.slane %v966_v59, 3  ;;  %v1819_v59 = vld [vmem:[%s6456_s5 + $0x58] sm:$0xff] }
  0xf7   : > { %1575 = vmatmul.mubr.bf16.gmra.mrb[4].mxu0 %v1003_v41  ;;  %v964_v4 = vsel %vm796_vm6, %v960_v53, %v4627_v40  ;;  %v965_v7 = vsel %vm796_vm6, %v961_v54, %v4628_v46  ;;  %v1635_v41 = vld [vmem:[%s6518_s2 + $0x8] sm:$0xf]  ;;  %v4992_v40 = vmov 0.0|0.0   ;;  %s6522_s2 = smov 104  }
  0xf8   : > { %1588 = vmatpush1.bf16.msra.mxu0 %v4781_v36  ;;  %1615 = vmatprep.mubr.bf16.mxu0 %v4990_v48  ;;  %v907_v55 = vpop.permute.xlu0 %906  ;;  %v979_v5 = vrot.slane %v964_v4, 3  ;;  %v980_v62 = vrot.slane %v965_v7, 3  ;;  %v919_v6 = vpop.permute.xlu1 %918  ;;  %v1813_v53 = vld [vmem:[%s6456_s5 + $0x28] sm:$0xff]  ;;  %v1816_v4 = vld [vmem:[%s6456_s5 + $0x40] sm:$0xff] }
  0xf9   : > { %1589 = vmatprep.subr.bf16.mxu0 %v4786_v42  ;;  %v959_v22 = vsel %vm788_vm3, %v4593_v45, %v907_v55  ;;  %v1808_v42 = vld [vmem:[%s6456_s5] sm:$0xff]  ;;  %v1814_v55 = vld [vmem:[%s6456_s5 + $0x30] sm:$0xff]  ;;  %v1817_v7 = vld [vmem:[%s6456_s5 + $0x48] sm:$0xff] }
  0xfa   : > { %v981_v2 = vsel %vm751_vm2, %v979_v5, %v980_v62  ;;  %v985_v3 = vsel %vm751_vm2, %v980_v62, %v984_v37  ;;  %v963_v8 = vsel %vm792_vm4, %v959_v22, %v919_v6  ;;  %v4271_v46 = vpack.c.bf16 %v1809_v43, %v1808_v42  ;;  %v1821_v5 = vld [vmem:[%s6456_s5 + $0x68] sm:$0xff]  ;;  %v1822_v22 = vld [vmem:[%s6456_s5 + $0x70] sm:$0xff]  ;;  %v1823_v6 = vld [vmem:[%s6456_s5 + $0x78] sm:$0xff] }
  0xfb   : > { %v1000_v19 = vpack.c.bf16 %v985_v3, %v981_v2  ;;  %v4280_v63 = vpack.c.bf16 %v1815_v56, %v1814_v55  ;;  %v4283_v57 = vpack.c.bf16 %v1817_v7, %v1816_v4  ;;  %v4289_v62 = vpack.c.bf16 %v1821_v5, %v1820_v61  ;;  %v1921_v43 = vld [vmem:[%s6457_s6 + $0x70] sm:$0xff]  ;;  %v4799_v4 = vld [vmem:[%s6458_s7 + $0x18] sm:$0xff]   ;;  %v4800_v7 = vld [vmem:[%s6458_s7 + $0x60] sm:$0xff]  }
  0xfc   : > { %1590 = vmatpush1.bf16.msra.mxu0 %v4784_v47  ;;  %v931_v0 = vpop.permute.xlu0 %930  ;;  %v1810_v47 = vld [vmem:[%s6456_s5 + $0x10] sm:$0xff] }
  0xfd   : > { %1591 = vmatprep.subr.bf16.mxu0 %v4789_v52  ;;  %v967_v9 = vsel %vm796_vm6, %v963_v8, %v931_v0  ;;  %v4274_v51 = vpack.c.bf16 %v1811_v49, %v1810_v47  ;;  %v1812_v52 = vld [vmem:[%s6456_s5 + $0x20] sm:$0xff]  ;;  %v1924_v49 = vld [vmem:[%s6457_s6 + $0x88] sm:$0xff]  ;;  %v4796_v55 = vld [vmem:[%s6458_s7 + $0x50] sm:$0xff]  }
  0xfe   : > { %v988_v10 = vrot.slane %v967_v9, 3  ;;  %v4277_v54 = vpack.c.bf16 %v1813_v53, %v1812_v52  ;;  %v1824_v0 = vld [vmem:[%s6456_s5 + $0x80] sm:$0xff]  ;;  %v4794_v53 = vld [vmem:[%s6458_s7 + $0x48] sm:$0xff]   ;;  %v4797_v56 = vld [vmem:[%s6458_s7 + $0x10] sm:$0xff]  }
  0xff   : > { %v1923_v47 = vld [vmem:[%s6457_s6 + $0x80] sm:$0xff] }
 0x100   : > { %1592 = vmatpush1.bf16.msra.mxu0 %v4787_v58  ;;  %v989_v45 = vsel %vm751_vm2, %v984_v37, %v988_v10  ;;  %v1818_v58 = vld [vmem:[%s6456_s5 + $0x50] sm:$0xff]  ;;  %v4292_v37 = vpack.c.bf16 %v1823_v6, %v1822_v22  ;;  %v1907_v10 = vld [vmem:[%s6457_s6] sm:$0xff] }
 0x101   : > { %3856 = vmatprep.subr.msk.bf16.mxu0 %vm1474_vm15, %v3855_v60  ;;  %v1005_v11 = vpack.c.bf16 %v989_v45, %v989_v45  ;;  %v4286_v60 = vpack.c.bf16 %v1819_v59, %v1818_v58  ;;  %v1908_v45 = vld [vmem:[%s6457_s6 + $0x8] sm:$0xff]  ;;  %v4793_v52 = vld [vmem:[%s6458_s7] sm:$0xff]   ;;  %v4804_v22 = vld [vmem:[%s6458_s7 + $0x70] sm:$0xff]  }
 0x102   : > { %v4298_v17 = vpack.c.bf16 %v1908_v45, %v1907_v10  ;;  %v4802_v58 = vld [vmem:[%s6458_s7 + $0x68] sm:$0xff]   ;;  %v4805_v6 = vld [vmem:[%s6458_s7 + $0x30] sm:$0xff]  }
 0x104   : > { %1594 = vmatpush1.bf16.msra.mxu0 %v1476_v1  ;;  %v1825_v1 = vld [vmem:[%s6456_s5 + $0x88] sm:$0xff] }
 0x105   : > { %v4295_v2 = vpack.c.bf16 %v1825_v1, %v1824_v0  ;;  %v4807_v0 = vld [vmem:[%s6458_s7 + $0x38] sm:$0xff]  }
 0x107   : > { %3857 = vmatmul.mubr.msk.bf16.vlgmr.msra.gmra.mrb[0].mxu0 %vm800_vm10, %v1000_v19 }
 0x108   : > { %1625 = vmatprep.mubr.bf16.mxu0 %v4990_v48 }
 0x10f   : > { %3858 = vmatmul.mubr.msk.bf16.gmra.mrb[4].mxu0 %vm800_vm10, %v1005_v11 }
 0x1da   : > { %v1617_v21 = vpop.f32.mrb[0].mxu0 }
 0x1db   : > { %v1619_v23 = vpop.f32.mrb[1].mxu0  ;;  %v4372_v26 = vadd.f32 %v1617_v21, %v1086_v20 }
 0x1dc   : > { %v1621_v25 = vpop.f32.mrb[2].mxu0  ;;  %v4373_v29 = vadd.f32 %v1619_v23, %v1090_v24 }
 0x1dd   : > { %v4374_v14 = vadd.f32 %v1621_v25, %v1086_v20  ;;  %v1623_v27 = vpop.f32.mrb[3].mxu0 }
 0x1de   : > { %v4375_v28 = vadd.f32 %v1623_v27, %v1090_v24  ;;  %v1912_v27 = vld [vmem:[%s6457_s6 + $0x28] sm:$0xff] }
 0x1df   : > { %v4264_v30 = vpack.c.bf16 %v4374_v14, %v4372_v26  ;;  %v1911_v14 = vld [vmem:[%s6457_s6 + $0x20] sm:$0xff] }
 0x1e0   : > { %v4262_v32 = vpack.c.bf16 %v4375_v28, %v4373_v29  ;;  %v4304_v29 = vpack.c.bf16 %v1912_v27, %v1911_v14  ;;  %v1913_v28 = vld [vmem:[%s6457_s6 + $0x30] sm:$0xff]  ;;  %v4824_v27 = vld [vmem:[%s6458_s7 + $0x1d8] sm:$0xff]  }
 0x1e2   : > { %v1627_v33 = vpop.f32.mrb[4].mxu0  ;;  %4263 = vmatprep.subr.bf16.mxu1 %v4262_v32 }
 0x1e3   : > { %v1629_v34 = vpop.f32.mrb[5].mxu0  ;;  %4265 = vmatpush1.bf16.msra.mxu1 %v4264_v30  ;;  %v4376_v36 = vadd.f32 %v1627_v33, %v1086_v20  ;;  %v1910_v20 = vld [vmem:[%s6457_s6 + $0x18] sm:$0xff]  ;;  %v1915_v33 = vld [vmem:[%s6457_s6 + $0x40] sm:$0xff] }
 0x1e4   : > { %v4377_v31 = vadd.f32 %v1629_v34, %v1090_v24  ;;  %v1631_v35 = vpop.f32.mrb[6].mxu0  ;;  %v4301_v26 = vpack.c.bf16 %v1910_v20, %v1909_v18  ;;  %v1916_v34 = vld [vmem:[%s6457_s6 + $0x48] sm:$0xff] }
 0x1e5   : > { %v1632_v38 = vpop.f32.mrb[7].mxu0  ;;  %v1917_v35 = vld [vmem:[%s6457_s6 + $0x50] sm:$0xff]  ;;  %v4816_v20 = vld [vmem:[%s6458_s7 + $0x1c8] sm:$0xff]  }
 0x1e6   : > { %1646 = vmatprep.subr.mxu1 %v4377_v31 }
 0x1e7   : > { %1647 = vmatpush1.msra.mxu1 %v4376_v36 }
 0x1e8   : > { %3859 = vmatmul.mubr.msk.f32.vlgmr.msra.gmra.mrb[0].mxu1 %vm768_vm5, %v1634_v39  ;;  %4267 = vmatprep.subr.bf16.mxu1 %v4262_v32  ;;  %v1919_v39 = vld [vmem:[%s6457_s6 + $0x60] sm:$0xff] }
 0x1e9   : > { %4269 = vmatpush1.bf16.msra.mxu1 %v4264_v30  ;;  %1712 = vmatprep.mubr.f32.mxu1 %v4991_v12  ;;  %v1914_v30 = vld [vmem:[%s6457_s6 + $0x38] sm:$0xff] }
 0x1ea   : > { %1731 = vmatprep.subr.mxu1 %v4377_v31  ;;  %v4307_v32 = vpack.c.bf16 %v1914_v30, %v1913_v28  ;;  %v4310_v31 = vpack.c.bf16 %v1916_v34, %v1915_v33  ;;  %v4828_v28 = vld [vmem:[%s6458_s7 + $0x1e0] sm:$0xff]   ;;  %v4832_v33 = vld [vmem:[%s6458_s7 + $0x1e8] sm:$0xff]  }
 0x1eb   : > { %v4829_v30 = vld [vmem:[%s6458_s7 + $0x1a0] sm:$0xff]   ;;  %v4833_v34 = vld [vmem:[%s6458_s7 + $0x1a8] sm:$0xff]  }
 0x1ec   : > { %3860 = vmatmul.mubr.msk.f32.gmra.mrb[2].mxu1 %vm768_vm5, %v1635_v41  ;;  %v1920_v41 = vld [vmem:[%s6457_s6 + $0x68] sm:$0xff] }
 0x1ed   : > { %1732 = vmatpush1.msra.mxu1 %v4376_v36  ;;  %1791 = vmatprep.mubr.f32.mxu1 %v4991_v12  ;;  %v1918_v36 = vld [vmem:[%s6457_s6 + $0x58] sm:$0xff]  ;;  %v4316_v42 = vpack.c.bf16 %v1920_v41, %v1919_v39  ;;  %v4837_v39 = vld [vmem:[%s6458_s7 + $0x1b0] sm:$0xff]  }
 0x1ee   : > { %4270 = vmatprep.subr.bf16.mxu1 %v4992_v40  ;;  %v4313_v38 = vpack.c.bf16 %v1918_v36, %v1917_v35  ;;  %v4840_v41 = vld [vmem:[%s6458_s7 + $0x1f8] sm:$0xff]  }
 0x1f0   : > { %3861 = vmatmul.mubr.msk.f32.vlgmr.msra.gmra.mrb[4].mxu1 %vm768_vm5, %v1719_v44  ;;  %v1922_v44 = vld [vmem:[%s6457_s6 + $0x78] sm:$0xff] }
 0x1f1   : > { %1797 = vmatprep.mubr.f32.mxu1 %v4991_v12  ;;  %4272 = vmatpush1.bf16.msra.mxu1 %v4271_v46  ;;  %v4319_v46 = vpack.c.bf16 %v1922_v44, %v1921_v43 }
 0x1f2   : > { %4273 = vmatprep.subr.bf16.mxu1 %v4992_v40 }
 0x1f4   : > { %3862 = vmatmul.mubr.msk.f32.gmra.mrb[6].mxu1 %vm768_vm5, %v1720_v50  ;;  %v4322_v50 = vpack.c.bf16 %v1924_v49, %v1923_v47 }
 0x1f5   : > { %4275 = vmatpush1.bf16.msra.mxu1 %v4274_v51  ;;  %v4792_v51 = vld [vmem:[%s6458_s7 + $0x40] sm:$0xff]  }
 0x1f6   : > { %4276 = vmatprep.subr.bf16.mxu1 %v4992_v40 }
 0x1f9   : > { %4278 = vmatpush1.bf16.msra.mxu1 %v4277_v54  ;;  %v4795_v54 = vld [vmem:[%s6458_s7 + $0x8] sm:$0xff]  }
 0x1fa   : > { %4279 = vmatprep.subr.bf16.mxu1 %v4992_v40 }
 0x1fd   : > { %4281 = vmatpush1.bf16.msra.mxu1 %v4280_v63  ;;  %v4798_v63 = vld [vmem:[%s6458_s7 + $0x58] sm:$0xff]  }
 0x1fe   : > { %4282 = vmatprep.subr.bf16.mxu1 %v4992_v40 }
 0x201   : > { %4284 = vmatpush1.bf16.msra.mxu1 %v4283_v57  ;;  %v4801_v57 = vld [vmem:[%s6458_s7 + $0x20] sm:$0xff]  }
 0x202   : > { %4285 = vmatprep.subr.bf16.mxu1 %v4992_v40 }
 0x205   : > { %4287 = vmatpush1.bf16.msra.mxu1 %v4286_v60 }
 0x206   : > { %4288 = vmatprep.subr.bf16.mxu1 %v4992_v40 }
 0x209   : > { %4290 = vmatpush1.bf16.msra.mxu1 %v4289_v62  ;;  %v4803_v62 = vld [vmem:[%s6458_s7 + $0x28] sm:$0xff]  }
 0x20a   : > { %4291 = vmatprep.subr.bf16.mxu1 %v4992_v40 }
 0x20d   : > { %4293 = vmatpush1.bf16.msra.mxu1 %v4292_v37  ;;  %v4806_v37 = vld [vmem:[%s6458_s7 + $0x78] sm:$0xff]  }
 0x20e   : > { %4294 = vmatprep.subr.bf16.mxu1 %v4992_v40 }
 0x211   : > { %4296 = vmatpush1.bf16.msra.mxu1 %v4295_v2 }
 0x212   : > { %4297 = vmatprep.subr.bf16.mxu1 %v4992_v40 }
 0x2bb   : > { %v1708_v3 = vpop.f32.mrb[0].mxu1 }
 0x2bc   : > { %v1710_v8 = vpop.f32.mrb[1].mxu1 }
 0x2bf   : > { %v1714_v9 = vpop.f32.mrb[2].mxu1 }
 0x2c0   : > { %v1716_v19 = vpop.f32.mrb[3].mxu1 }
 0x2c3   : > { %v1793_v11 = vpop.f32.mrb[4].mxu1 }
 0x2c4   : > { %v1804_v13 = vmax.f32 %v1708_v3, %v1793_v11  ;;  %v1795_v15 = vpop.f32.mrb[5].mxu1 }
 0x2c5   : > { %v1805_v16 = vmax.f32 %v1710_v8, %v1795_v15  ;;  %v4808_v8 = vld [vmem:[%s6458_s7 + $0xc0] sm:$0xff]  }
 0x2c7   : > { %v1799_v21 = vpop.f32.mrb[6].mxu1  ;;  %3863 = vmatprep.mubr.msk.f32.mxu1 %vm788_vm3, %v1805_v16 }
 0x2c8   : > { %v1806_v24 = vmax.f32 %v1714_v9, %v1799_v21  ;;  %v1801_v23 = vpop.f32.mrb[7].mxu1  ;;  %1897 = vmatmul.mubr.f32.vlgmr.msra.gmra.mrb[8].mxu1 %v1804_v13  ;;  %v4817_v21 = vld [vmem:[%s6458_s7 + $0x188] sm:$0xff]  }
 0x2c9   : > { %v1807_v25 = vmax.f32 %v1716_v19, %v1801_v23  ;;  %4299 = vmatpush1.bf16.msra.mxu1 %v4298_v17  ;;  %v4813_v17 = vld [vmem:[%s6458_s7 + $0x180] sm:$0xff]   ;;  %v4820_v23 = vld [vmem:[%s6458_s7 + $0x1d0] sm:$0xff]  }
 0x2ca   : > { %4300 = vmatprep.subr.bf16.mxu1 %v4992_v40 }
 0x2cb   : > { %3864 = vmatprep.mubr.msk.f32.mxu1 %vm788_vm3, %v1807_v25 }
 0x2cc   : > { %1902 = vmatmul.mubr.f32.gmra.mrb[10].mxu1 %v1806_v24 }
 0x2cd   : > { %4302 = vmatpush1.bf16.msra.mxu1 %v4301_v26  ;;  %3865 = vmatprep.mubr.msk.f32.mxu1 %vm788_vm3, %v1805_v16 }
 0x2ce   : > { %4303 = vmatprep.subr.bf16.mxu1 %v4992_v40 }
 0x2d1   : > { %4305 = vmatpush1.bf16.msra.mxu1 %v4304_v29  ;;  %v4825_v29 = vld [vmem:[%s6458_s7 + $0x198] sm:$0xff]  }
 0x2d2   : > { %4306 = vmatprep.subr.bf16.mxu1 %v4992_v40 }
 0x2d5   : > { %4308 = vmatpush1.bf16.msra.mxu1 %v4307_v32 }
 0x2d6   : > { %4309 = vmatprep.subr.bf16.mxu1 %v4992_v40 }
 0x2d9   : > { %4311 = vmatpush1.bf16.msra.mxu1 %v4310_v31 }
 0x2da   : > { %4312 = vmatprep.subr.bf16.mxu1 %v4992_v40 }
 0x2dd   : > { %4314 = vmatpush1.bf16.msra.mxu1 %v4313_v38  ;;  %v4836_v38 = vld [vmem:[%s6458_s7 + $0x1f0] sm:$0xff]  }
 0x2de   : > { %4315 = vmatprep.subr.bf16.mxu1 %v4992_v40 }
 0x2e1   : > { %4317 = vmatpush1.bf16.msra.mxu1 %v4316_v42  ;;  %v4841_v42 = vld [vmem:[%s6458_s7 + $0x1b8] sm:$0xff]  }
 0x2e2   : > { %4318 = vmatprep.subr.bf16.mxu1 %v4992_v40 }
 0x2e5   : > { %4320 = vmatpush1.bf16.msra.mxu1 %v4319_v46 }
 0x2e6   : > { %4321 = vmatprep.subr.bf16.mxu1 %v4992_v40 }
 0x2e9   : > { %4323 = vmatpush1.bf16.msra.mxu1 %v4322_v50 }
 0x2ea   : > { %3982 = vmatprep.subr.bf16.mxu1 %v4792_v51 }
 0x2ec   : > { %1990 = vmatmul.mubr.f32.vlgmr.msra.gmra.mrb[12].mxu1 %v1804_v13  ;;  %v4812_v13 = vld [vmem:[%s6458_s7 + $0x1c0] sm:$0xff]  }
 0x2ed   : > { %3866 = vmatprep.mubr.msk.f32.mxu1 %vm788_vm3, %v1807_v25  ;;  %3983 = vmatpush3.bf16.msra.mxu1 %v4793_v52  ;;  %v4821_v25 = vld [vmem:[%s6458_s7 + $0x190] sm:$0xff]  }
 0x2ee   : > { %3984 = vmatprep.subr.bf16.mxu1 %v4794_v53  ;;  %4048 = vmatprep.subr.bf16.mxu0 %v4812_v13 }
 0x2ef   : > { %4049 = vmatpush3.bf16.msra.mxu0 %v4813_v17  ;;  %v4830_v17 = vld [vmem:[%s6458_s7 + $0xf0] sm:$0xff]  }
 0x2f0   : > { %1995 = vmatmul.mubr.f32.gmra.mrb[14].mxu1 %v1806_v24  ;;  %4050 = vmatprep.subr.bf16.mxu0 %v4816_v20 }
 0x2f1   : > { %3985 = vmatpush3.bf16.msra.mxu1 %v4795_v54 }
 0x2f2   : > { %3986 = vmatprep.subr.bf16.mxu1 %v4796_v55 }
 0x2f3   : > { %4051 = vmatpush3.bf16.msra.mxu0 %v4817_v21  ;;  %v4831_v21 = vld [vmem:[%s6458_s7 + $0xb0] sm:$0xff]  }
 0x2f4   : > { %4052 = vmatprep.subr.bf16.mxu0 %v4820_v23 }
 0x2f5   : > { %3987 = vmatpush3.bf16.msra.mxu1 %v4797_v56 }
 0x2f6   : > { %3988 = vmatprep.subr.bf16.mxu1 %v4798_v63 }
 0x2f7   : > { %4053 = vmatpush3.bf16.msra.mxu0 %v4821_v25 }
 0x2f8   : > { %4054 = vmatprep.subr.bf16.mxu0 %v4824_v27 }
 0x2f9   : > { %3989 = vmatpush3.bf16.msra.mxu1 %v4799_v4  ;;  %v4809_v4 = vld [vmem:[%s6458_s7 + $0x80] sm:$0xff]  }
 0x2fa   : > { %3990 = vmatprep.subr.bf16.mxu1 %v4800_v7 }
 0x2fb   : > { %4055 = vmatpush3.bf16.msra.mxu0 %v4825_v29 }
 0x2fc   : > { %4056 = vmatprep.subr.bf16.mxu0 %v4828_v28 }
 0x2fd   : > { %3991 = vmatpush3.bf16.msra.mxu1 %v4801_v57  ;;  %v4810_v57 = vld [vmem:[%s6458_s7 + $0xc8] sm:$0xff]  }
 0x2fe   : > { %3992 = vmatprep.subr.bf16.mxu1 %v4802_v58 }
 0x2ff   : > { %4057 = vmatpush3.bf16.msra.mxu0 %v4829_v30 }
 0x300   : > { %4058 = vmatprep.subr.bf16.mxu0 %v4832_v33 }
 0x301   : > { %3993 = vmatpush3.bf16.msra.mxu1 %v4803_v62 }
 0x302   : > { %3994 = vmatprep.subr.bf16.mxu1 %v4804_v22 }
 0x303   : > { %4059 = vmatpush3.bf16.msra.mxu0 %v4833_v34 }
 0x304   : > { %4060 = vmatprep.subr.bf16.mxu0 %v4836_v38 }
 0x305   : > { %3995 = vmatpush3.bf16.msra.mxu1 %v4805_v6 }
 0x306   : > { %3996 = vmatprep.subr.bf16.mxu1 %v4806_v37 }
 0x307   : > { %4061 = vmatpush3.bf16.msra.mxu0 %v4837_v39 }
 0x308   : > { %4062 = vmatprep.subr.bf16.mxu0 %v4840_v41 }
 0x309   : > { %3997 = vmatpush3.bf16.msra.mxu1 %v4807_v0  ;;  %v4815_v0 = vld [vmem:[%s6458_s7 + $0x90] sm:$0xff]  }
 0x30a   : > { %4004 = vmatprep.subr.bf16.mxu1 %v4808_v8  ;;  %v4819_v8 = vld [vmem:[%s6458_s7 + $0x98] sm:$0xff]  }
 0x30b   : > { %4063 = vmatpush3.bf16.msra.mxu0 %v4841_v42  ;;  %v4838_v42 = vld [vmem:[%s6458_s7 + $0x140] sm:$0xff]  }
 0x30c   : > { %4146 = vmatprep.subr.mxu0 %v4991_v12 }
 0x39b   : > { %v1898_v59 = vpop.f32.mrb[8].mxu1 }
 0x39c   : > { %v1900_v60 = vpop.f32.mrb[9].mxu1 }
 0x39d   : > { %v4811_v60 = vld [vmem:[%s6458_s7 + $0x88] sm:$0xff]  }
 0x39f   : > { %v1903_v61 = vpop.f32.mrb[10].mxu1 }
 0x3a0   : > { %v1905_v5 = vpop.f32.mrb[11].mxu1 }
 0x3bf   : > { %v1991_v1 = vpop.f32.mrb[12].mxu1 }
 0x3c0   : > { %v2000_v2 = vmax.f32 %v1898_v59, %v1991_v1  ;;  %v1993_v3 = vpop.f32.mrb[13].mxu1  ;;  %v4818_v1 = vld [vmem:[%s6458_s7 + $0xd8] sm:$0xff]  }
 0x3c2   : > { %v5879_v9 = vmax.f32 %v2000_v2, 0.0 }
 0x3c3   : > { %v1996_v19 = vpop.f32.mrb[14].mxu1 }
 0x3c4   : > { %v2001_v10 = vmax.f32 %v1903_v61, %v1996_v19  ;;  %2011 = vrot.lane.b32.xlu0 %v5879_v9, %s4993_s0  ;;  %2008 = vrot.lane.b32.xlu1 %v5879_v9, %s6513_s26  ;;  %v1998_v45 = vpop.f32.mrb[15].mxu1  ;;  %v2018_v16 = vrot.slane %v5879_v9, 1  ;;  %v2036_v26 = vrot.slane %v5879_v9, 2  ;;  %v2054_v31 = vrot.slane %v5879_v9, 3  ;;  %v4814_v61 = vld [vmem:[%s6458_s7 + $0xd0] sm:$0xff]  }
 0x3c5   : > { %v4823_v45 = vld [vmem:[%s6458_s7 + $0xa0] sm:$0xff]  }
 0x3c6   : > { %v5884_v11 = vmax.f32 %v2001_v10, 0.0 }
 0x3c8   : > { %v2019_v15 = vrot.slane %v5884_v11, 1  ;;  %2005 = vrot.lane.b32.xlu0 %v5879_v9, %s4994_s19  ;;  %2014 = vrot.lane.b32.xlu1 %v5879_v9, %s4995_s22  ;;  %v2037_v24 = vrot.slane %v5884_v11, 2  ;;  %s4997_s19 = smov 26   ;;  %s4998_s22 = smov 24   ;;  %v2055_v32 = vrot.slane %v5884_v11, 3  ;;  %v4629_v35 = vpack.i.bf16 %v5884_v11, %v5879_v9  ;;  %v4826_v11 = vld [vmem:[%s6458_s7 + $0xe8] sm:$0xff]  }
 0x3ca   : > { %v2020_v18 = vsel %vm645_vm0, %v2018_v16, %v2019_v15  ;;  %v2038_v14 = vsel %vm698_vm1, %v2036_v26, %v2037_v24  ;;  %v2056_v36 = vsel %vm751_vm2, %v2054_v31, %v2055_v32  ;;  %vm6523_vm0 = vcmask 916480   ;;  %v4827_v16 = vld [vmem:[%s6458_s7 + $0xa8] sm:$0xff]   ;;  %v4834_v24 = vld [vmem:[%s6458_s7 + $0xf8] sm:$0xff]  }
 0x3cb   : > { %v4649_v43 = vpack.i.bf16 %v2019_v15, %v2020_v18  ;;  %vm6524_vm1 = vmmov %vm6523_vm0 }
 0x3cc   : > { %2030 = vrot.lane.b32.xlu0 %v2020_v18, %s4996_s23  ;;  %2021 = vrot.lane.b32.xlu1 %v2020_v18, %s6515_s21  ;;  %s6520_s23 = smov 96   ;;  %vm6525_vm4 = vmmov %vm6523_vm0 }
 0x3cd   : > { %vm6526_vm5 = vmmov %vm6523_vm0 }
 0x3d0   : > { %2024 = vrot.lane.b32.xlu0 %v2020_v18, %s4997_s19  ;;  %2033 = vrot.lane.b32.xlu1 %v2020_v18, %s4998_s22  ;;  %s4999_s19 = smov 94   ;;  %s5000_s22 = smov 10  }
 0x3d4   : > { %2027 = vrot.lane.b32.xlu0 %v2020_v18, %s6519_s24  ;;  %2039 = vrot.lane.b32.xlu1 %v2038_v14, %s6520_s23  ;;  %s5001_s24 = smov 52   ;;  %s5002_s23 = smov 8  }
 0x3d8   : > { %2048 = vrot.lane.b32.xlu0 %v2038_v14, %s4999_s19  ;;  %2042 = vrot.lane.b32.xlu1 %v2038_v14, %s5000_s22  ;;  %s5003_s19 = smov 78   ;;  %s5004_s22 = smov 80  }
 0x3dc   : > { %2045 = vrot.lane.b32.xlu0 %v2038_v14, %s5001_s24  ;;  %2051 = vrot.lane.b32.xlu1 %v2038_v14, %s5002_s23  ;;  %s5005_s24 = smov 36   ;;  %s6521_s23 = smov 120  }
 0x3e0   : > { %4630 = vrot.lane.b32.xlu0 %v4629_v35, %s5003_s19  ;;  %2057 = vrot.lane.b32.xlu1 %v2056_v36, %s5004_s22  ;;  %s5008_s19 = smov 20   ;;  %s5009_s22 = smov 106  }
 0x3e4   : > { %4645 = vrot.lane.b32.xlu0 %v4629_v35, %s5005_s24  ;;  %4635 = vrot.lane.b32.xlu1 %v4629_v35, %s6521_s23  ;;  %s6527_s23 = sld [smem:[#allocation15_spill]] }
 0x3e8   : > { %4650 = vrot.lane.b32.xlu0 %v4649_v43, %s5006_s27  ;;  %4640 = vrot.lane.b32.xlu1 %v4629_v35, %s5007_s25  ;;  %v4835_v35 = vld [vmem:[%s6458_s7 + $0xb8] sm:$0xff]  }
 0x3ec   : > { %4660 = vrot.lane.b32.xlu0 %v4649_v43, %s5008_s19  ;;  %4655 = vrot.lane.b32.xlu1 %v4649_v43, %s5009_s22 }
 0x3f0   : > { %4670 = vrot.lane.b32.xlu0 %v4649_v43, %s6522_s2  ;;  %4665 = vrot.lane.b32.xlu1 %v4649_v43, %s5010_s20  ;;  %s593_s2 = sand.u32 1, %s4956_s30   ;;  %s3978_s20 = sshll.u32 %s5134_s1, 4 }
 0x3f1   : > { %s6408_s28 = scalar_lea.hbm %s6527_s23, %s3978_s20  ;;  %s3707_s0 = scalar_lea.sflag [#allocation3], %s593_s2 }
 0x3f2   : > { %s5012_s1 = smov [#allocation2]  }
 0x3f3   : > { %s4906_s19 = sshll.u32 %s5012_s1, 4  ;;  %s4907_s19 = int_to_ptr.vmem [resolvable:$false] %s4906_s19 }
 0x3f4   : > { %s4908_s22 = scalar_lea.vmem %s4907_s19, 32 }
 0x436   : > { %v2012_v44 = vpop.permute.xlu0 %2011  ;;  %v2009_v46 = vpop.permute.xlu1 %2008 }
 0x437   : > { %v2062_v51 = vsel %vm788_vm3, %v2009_v46, %v2012_v44 }
 0x43a   : > { %v2006_v47 = vpop.permute.xlu0 %2005  ;;  %v2015_v49 = vpop.permute.xlu1 %2014 }
 0x43b   : > { %v2060_v50 = vsel %vm772_vm7, %v5879_v9, %v2006_v47  ;;  %v2063_v53 = vsel %vm796_vm6, %v2062_v51, %v2015_v49  ;;  %v4822_v9 = vld [vmem:[%s6458_s7 + $0xe0] sm:$0xff]  }
 0x43c   : > { %v2061_v52 = vsel %vm780_vm9, %v2060_v50, %v2009_v46 }
 0x43d   : > { %v2162_v7 = vpack.c.bf16 %v2061_v52, %v2061_v52 }
 0x43e   : > { %v2031_v54 = vpop.permute.xlu0 %2030  ;;  %v2022_v55 = vpop.permute.xlu1 %2021 }
 0x43f   : > { %v2064_v56 = vsel %vm6523_vm0, %v2063_v53, %v2022_v55 }
 0x440   : > { %v2163_v63 = vpack.c.bf16 %v2064_v56, %v2064_v56 }
 0x442   : > { %v2025_v58 = vpop.permute.xlu0 %2024  ;;  %2814 = vmatprep.mubr.bf16.mxu1 %v2163_v63  ;;  %v2034_v59 = vpop.permute.xlu1 %2033 }
 0x443   : > { %2815 = vmatmul.mubr.bf16.vlgmr.msra.gmra.mrb[16].mxu1 %v2162_v7  ;;  %v2067_v5 = vsel %vm772_vm7, %v2031_v54, %v2034_v59  ;;  %v2065_v23 = vsel %vm812_vm14, %v2022_v55, %v2025_v58 }
 0x444   : > { %4005 = vmatpush3.bf16.msra.mxu1 %v4809_v4  ;;  %v4839_v4 = vld [vmem:[%s6458_s7 + $0x100] sm:$0xff]  }
 0x445   : > { %4006 = vmatprep.subr.bf16.mxu1 %v4810_v57 }
 0x446   : > { %v2028_v62 = vpop.permute.xlu0 %2027  ;;  %v5977_v22 = vpop.permute.xlu1 %2039 }
 0x447   : > { %v2068_v6 = vsel %vm780_vm9, %v2067_v5, %v5977_v22  ;;  %v2066_v33 = vsel %vm820_vm11, %v2065_v23, %v2028_v62  ;;  %v4845_v23 = vld [vmem:[%s6458_s7 + $0x110] sm:$0xff]  }
 0x448   : > { %v2165_v37 = vpack.c.bf16 %v2068_v6, %v2068_v6  ;;  %4007 = vmatpush3.bf16.msra.mxu1 %v4811_v60  ;;  %v2164_v50 = vpack.c.bf16 %v2066_v33, %v2066_v33  ;;  %v4842_v60 = vld [vmem:[%s6458_s7 + $0x148] sm:$0xff]   ;;  %v4852_v33 = vld [vmem:[%s6458_s7 + $0x170] sm:$0xff]  }
 0x449   : > { %4008 = vmatprep.subr.bf16.mxu1 %v4814_v61 }
 0x44a   : > { %v5987_v2 = vpop.permute.xlu0 %2048  ;;  %2854 = vmatprep.mubr.bf16.mxu1 %v2165_v37  ;;  %v5989_v3 = vpop.permute.xlu1 %2042 }
 0x44c   : > { %4009 = vmatpush3.bf16.msra.mxu1 %v4815_v0 }
 0x44d   : > { %4010 = vmatprep.subr.bf16.mxu1 %v4818_v1 }
 0x44e   : > { %v5997_v19 = vpop.permute.xlu0 %2045  ;;  %v2052_v10 = vpop.permute.xlu1 %2051 }
 0x44f   : > { %v2072_v43 = vsel %vm812_vm14, %v5987_v2, %v2052_v10 }
 0x450   : > { %4011 = vmatpush3.bf16.msra.mxu1 %v4819_v8 }
 0x451   : > { %4012 = vmatprep.subr.bf16.mxu1 %v4822_v9  ;;  %v4843_v9 = vld [vmem:[%s6458_s7 + $0x108] sm:$0xff]  }
 0x452   : > { %v4631_v13 = vpop.permute.xlu0 %4630  ;;  %v2058_v15 = vpop.permute.xlu1 %2057 }
 0x453   : > { %v4633_v34 = vunpack.i.h.bf16 %v4631_v13  ;;  %v4632_v31 = vunpack.i.l.bf16 %v4631_v13  ;;  %v2073_v51 = vsel %vm820_vm11, %v2072_v43, %v2058_v15  ;;  %v4844_v15 = vld [vmem:[%s6458_s7 + $0x150] sm:$0xff]   ;;  %v4855_v43 = vld [vmem:[%s6458_s7 + $0x138] sm:$0xff]  }
 0x454   : > { %4013 = vmatpush3.bf16.msra.mxu1 %v4823_v45  ;;  %v2167_v61 = vpack.c.bf16 %v2073_v51, %v2073_v51  ;;  %v4861_v51 = vld [vmem:[%s6458_s7 + $0x228] sm:$0xff]  }
 0x455   : > { %4014 = vmatprep.subr.bf16.mxu1 %v4826_v11 }
 0x456   : > { %v4646_v18 = vpop.permute.xlu0 %4645  ;;  %v4636_v20 = vpop.permute.xlu1 %4635 }
 0x457   : > { %v4648_v25 = vunpack.i.h.bf16 %v4646_v18  ;;  %v4647_v26 = vunpack.i.l.bf16 %v4646_v18  ;;  %v4638_v29 = vunpack.i.h.bf16 %v4636_v20  ;;  %v4637_v28 = vunpack.i.l.bf16 %v4636_v20 }
 0x458   : > { %4015 = vmatpush3.bf16.msra.mxu1 %v4827_v16 }
 0x459   : > { %4016 = vmatprep.subr.bf16.mxu1 %v4830_v17  ;;  %v2131_v52 = vsel %vm788_vm3, %v4633_v34, %v4638_v29  ;;  %v2130_v53 = vsel %vm788_vm3, %v4632_v31, %v4637_v28  ;;  %v4849_v29 = vld [vmem:[%s6458_s7 + $0x120] sm:$0xff]   ;;  %v4850_v28 = vld [vmem:[%s6458_s7 + $0x168] sm:$0xff]  }
 0x45a   : > { %v4651_v14 = vpop.permute.xlu0 %4650  ;;  %v4641_v27 = vpop.permute.xlu1 %4640 }
 0x45b   : > { %v4643_v30 = vunpack.i.h.bf16 %v4641_v27  ;;  %v4642_v32 = vunpack.i.l.bf16 %v4641_v27  ;;  %v4653_v36 = vunpack.i.h.bf16 %v4651_v14  ;;  %v4652_v38 = vunpack.i.l.bf16 %v4651_v14  ;;  %v4847_v14 = vld [vmem:[%s6458_s7 + $0x118] sm:$0xff]   ;;  %v4848_v27 = vld [vmem:[%s6458_s7 + $0x160] sm:$0xff]  }
 0x45c   : > { %4017 = vmatpush3.bf16.msra.mxu1 %v4831_v21 }
 0x45d   : > { %v2127_v39 = vsel %vm772_vm7, %v4643_v30, %v4648_v25  ;;  %v2126_v41 = vsel %vm772_vm7, %v4642_v32, %v4647_v26  ;;  %4018 = vmatprep.subr.bf16.mxu1 %v4834_v24  ;;  %v2132_v7 = vsel %vm796_vm6, %v2130_v53, %v4652_v38  ;;  %v2133_v57 = vsel %vm796_vm6, %v2131_v52, %v4653_v36  ;;  %v4846_v25 = vld [vmem:[%s6458_s7 + $0x158] sm:$0xff]   ;;  %v4851_v32 = vld [vmem:[%s6458_s7 + $0x128] sm:$0xff]   ;;  %v4862_v52 = vld [vmem:[%s6458_s7 + $0x230] sm:$0xff]  }
 0x45e   : > { %v2129_v44 = vsel %vm780_vm9, %v2127_v39, %v4633_v34  ;;  %v2128_v46 = vsel %vm780_vm9, %v2126_v41, %v4632_v31  ;;  %v4661_v47 = vpop.permute.xlu0 %4660  ;;  %v4656_v49 = vpop.permute.xlu1 %4655  ;;  %v4854_v36 = vld [vmem:[%s6458_s7 + $0x178] sm:$0xff]   ;;  %v2069_v38 = vsel %vm788_vm3, %v5977_v22, %v5989_v3  ;;  %v4856_v22 = vld [vmem:[%s6458_s7 + $0x200] sm:$0xff]   ;;  %vm3649_vm3 = vcmask 1041408  }
 0x45f   : > { %v2147_v54 = vrot.slane %v2129_v44, 3  ;;  %v2146_v55 = vrot.slane %v2128_v46, 3  ;;  %v4658_v56 = vunpack.i.h.bf16 %v4656_v49  ;;  %v4657_v63 = vunpack.i.l.bf16 %v4656_v49  ;;  %v4859_v49 = vld [vmem:[%s6458_s7 + $0x218] sm:$0xff]  }
 0x460   : > { %4019 = vmatpush3.bf16.msra.mxu1 %v4835_v35  ;;  %v4663_v58 = vunpack.i.h.bf16 %v4661_v47  ;;  %v4662_v59 = vunpack.i.l.bf16 %v4661_v47  ;;  %v4853_v35 = vld [vmem:[%s6458_s7 + $0x130] sm:$0xff]   ;;  %v2070_v39 = vsel %vm796_vm6, %v2069_v38, %v5997_v19  ;;  %v4857_v47 = vld [vmem:[%s6458_s7 + $0x208] sm:$0xff]   ;;  %v4863_v53 = vld [vmem:[%s6458_s7 + $0x238] sm:$0xff]  }
 0x461   : > { %4026 = vmatprep.subr.bf16.mxu1 %v4838_v42  ;;  %v2134_v5 = vsel %vm6524_vm1, %v2132_v7, %v4657_v63  ;;  %v2135_v62 = vsel %vm6525_vm4, %v2133_v57, %v4658_v56  ;;  %v2148_v10 = vsel %vm751_vm2, %v2146_v55, %v2147_v54  ;;  %v2071_v44 = vsel %vm6526_vm5, %v2070_v39, %v5987_v2  ;;  %v4858_v2 = vld [vmem:[%s6458_s7 + $0x210] sm:$0xff]   ;;  %v4864_v54 = vld [vmem:[%s6458_s7 + $0x240] sm:$0xff]   ;;  %v4865_v55 = vld [vmem:[%s6458_s7 + $0x248] sm:$0xff]  }
 0x462   : > { %v4666_v6 = vpop.permute.xlu1 %4665  ;;  %v2149_v37 = vrot.slane %v2134_v5, 3  ;;  %v2150_v0 = vrot.slane %v2135_v62, 3  ;;  %v2137_v45 = vsel %vm812_vm14, %v4658_v56, %v4663_v58  ;;  %v2136_v11 = vsel %vm812_vm14, %v4657_v63, %v4662_v59  ;;  %v4671_v30 = vpop.permute.xlu0 %4670  ;;  %v4866_v56 = vld [vmem:[%s6458_s7 + $0x250] sm:$0xff]   ;;  %v3220_v58 = vld [vmem:[%s6463_s12 + $0x18] sm:$0xff] }
 0x463   : > { %2855 = vmatmul.mubr.bf16.vlgmr.msra.gmra.mrb[20].mxu1 %v2164_v50  ;;  %v4668_v1 = vunpack.i.h.bf16 %v4666_v6  ;;  %v4667_v8 = vunpack.i.l.bf16 %v4666_v6  ;;  %v2168_v24 = vpack.c.bf16 %v2148_v10, %v2148_v10  ;;  %v4673_v34 = vunpack.i.h.bf16 %v4671_v30  ;;  %v4860_v50 = vld [vmem:[%s6458_s7 + $0x220] sm:$0xff]   ;;  %v3219_v57 = vld [vmem:[%s6463_s12 + $0x10] sm:$0xff] }
 0x464   : > { %4027 = vmatpush3.bf16.msra.mxu1 %v4839_v4  ;;  %2894 = vmatprep.mubr.bf16.mxu1 %v2167_v61  ;;  %v2151_v13 = vsel %vm751_vm2, %v2149_v37, %v2150_v0  ;;  %v4672_v31 = vunpack.i.l.bf16 %v4671_v30  ;;  %v2166_v3 = vpack.c.bf16 %v2071_v44, %v2071_v44  ;;  %v3217_v4 = vld [vmem:[%s6463_s12] sm:$0xff]  ;;  %v4352_v59 = vpack.c.bf16 %v3220_v58, %v3219_v57  ;;  %v3222_v61 = vld [vmem:[%s6463_s12 + $0x28] sm:$0xff]  ;;  %v3223_v37 = vld [vmem:[%s6463_s12 + $0x30] sm:$0xff] }
 0x465   : > { %4028 = vmatprep.subr.bf16.mxu1 %v4842_v60  ;;  %v2138_v16 = vsel %vm820_vm11, %v2136_v11, %v4667_v8  ;;  %v2139_v17 = vsel %vm820_vm11, %v2137_v45, %v4668_v1  ;;  %v2169_v18 = vpack.c.bf16 %v2151_v13, %v2151_v13  ;;  %v2156_v41 = vrot.slane %v4673_v34, 3  ;;  %v3221_v60 = vld [vmem:[%s6463_s12 + $0x20] sm:$0xff]  ;;  %v3224_v0 = vld [vmem:[%s6463_s12 + $0x38] sm:$0xff]  ;;  %v3226_v11 = vld [vmem:[%s6463_s12 + $0x48] sm:$0xff] }
 0x466   : > { %v2152_v20 = vrot.slane %v2138_v16, 3  ;;  %v2153_v21 = vrot.slane %v2139_v17, 3  ;;  %v2155_v42 = vrot.slane %v4672_v31, 3  ;;  %v4355_v5 = vpack.c.bf16 %v3222_v61, %v3221_v60  ;;  %v3225_v45 = vld [vmem:[%s6463_s12 + $0x40] sm:$0xff]  ;;  %v3228_v16 = vld [vmem:[%s6463_s12 + $0x58] sm:$0xff]  ;;  %v3140_v58 = vld [vmem:[%s6462_s11 + $0x48] sm:$0xff] }
 0x467   : > { %2934 = vmatprep.mubr.bf16.mxu0 %v2169_v18  ;;  %v4361_v13 = vpack.c.bf16 %v3226_v11, %v3225_v45  ;;  %v3229_v18 = vld [vmem:[%s6463_s12 + $0x60] sm:$0xff]  ;;  %v3141_v60 = vld [vmem:[%s6462_s11 + $0x50] sm:$0xff]  ;;  %v3142_v61 = vld [vmem:[%s6462_s11 + $0x58] sm:$0xff] }
 0x468   : > { %4029 = vmatpush3.bf16.msra.mxu1 %v4843_v9  ;;  %2935 = vmatmul.mubr.bf16.vlgmr.msra.gmra.mrb[8].mxu0 %v2168_v24  ;;  %v6063_v26 = vsel %vm751_vm2, %v2152_v20, %v2153_v21  ;;  %v2157_v46 = vsel %vm751_vm2, %v2155_v42, %v2156_v41  ;;  %vm5011_vm2 = vmmov 0   ;;  %v4358_v9 = vpack.c.bf16 %v3224_v0, %v3223_v37  ;;  %v3230_v20 = vld [vmem:[%s6463_s12 + $0x68] sm:$0xff]  ;;  %v3867_v24 = vld [vmem:[%s6459_s8] ss:$0 sm:$0xff]  ;;  %v3145_v0 = vld [vmem:[%s6462_s11 + $0x70] sm:$0xff] }
 0x469   : > { %4030 = vmatprep.subr.bf16.mxu1 %v4844_v15  ;;  %v2171_v19 = vpack.c.bf16 %v2157_v46, %v2157_v46  ;;  %v2170_v63 = vpack.c.bf16 %v6063_v26, %v6063_v26  ;;  %4148 = vmatprep.mubr.msk.f32.mxu0 %vm5011_vm2, %v4991_v12  ;;  %v3227_v15 = vld [vmem:[%s6463_s12 + $0x50] sm:$0xff]  ;;  %v4367_v21 = vpack.c.bf16 %v3230_v20, %v3229_v18  ;;  %v3139_v57 = vld [vmem:[%s6462_s11 + $0x40] sm:$0xff]  ;;  %v4869_v20 = vld [vmem:[%s6464_s13 + $0x48] sm:$0xff]  }
 0x46a   : > { %v4364_v17 = vpack.c.bf16 %v3228_v16, %v3227_v15  ;;  %v4868_v18 = vld [vmem:[%s6464_s13] sm:$0xff]  }
 0x46c   : > { %4031 = vmatpush3.bf16.msra.mxu1 %v4845_v23 }
 0x46d   : > { %4032 = vmatprep.subr.bf16.mxu1 %v4846_v25 }
 0x470   : > { %4033 = vmatpush3.bf16.msra.mxu1 %v4847_v14 }
 0x471   : > { %4034 = vmatprep.subr.bf16.mxu1 %v4848_v27 }
 0x474   : > { %4035 = vmatpush3.bf16.msra.mxu1 %v4849_v29 }
 0x475   : > { %4036 = vmatprep.subr.bf16.mxu1 %v4850_v28 }
 0x478   : > { %4037 = vmatpush3.bf16.msra.mxu1 %v4851_v32 }
 0x479   : > { %4038 = vmatprep.subr.bf16.mxu1 %v4852_v33 }
 0x47c   : > { %4039 = vmatpush3.bf16.msra.mxu1 %v4853_v35 }
 0x47d   : > { %4040 = vmatprep.subr.bf16.mxu1 %v4854_v36 }
 0x480   : > { %4041 = vmatpush3.bf16.msra.mxu1 %v4855_v43 }
 0x481   : > { %2942 = vmatprep.subr.bf16.mxu1 %v4990_v48 }
 0x483   : > { %2895 = vmatmul.mubr.bf16.vlgmr.msra.gmra.mrb[24].mxu1 %v2166_v3  ;;  %v2982_v3 = vld [vmem:[%s6460_s9] sm:$0xf] }
 0x484   : > { %2943 = vmatpush1.bf16.msra.mxu1 %v4856_v22  ;;  %3943 = vmatprep.mubr.msk.bf16.mxu1 %vm772_vm7, %v2171_v19  ;;  %vm3693_vm7 = vcmask 73728  }
 0x485   : > { %2944 = vmatprep.subr.bf16.mxu1 %v4990_v48 }
 0x488   : > { %2945 = vmatpush1.bf16.msra.mxu1 %v4857_v47  ;;  %v3131_v47 = vld [vmem:[%s6462_s11] sm:$0xff] }
 0x489   : > { %2946 = vmatprep.subr.bf16.mxu1 %v4990_v48 }
 0x48c   : > { %2947 = vmatpush1.bf16.msra.mxu1 %v4858_v2  ;;  %v3132_v2 = vld [vmem:[%s6462_s11 + $0x8] sm:$0xff] }
 0x48d   : > { %2948 = vmatprep.subr.bf16.mxu1 %v4990_v48 }
 0x490   : > { %2949 = vmatpush1.bf16.msra.mxu1 %v4859_v49 }
 0x491   : > { %2950 = vmatprep.subr.bf16.mxu1 %v4990_v48 }
 0x494   : > { %2951 = vmatpush1.bf16.msra.mxu1 %v4860_v50  ;;  %v3056_v50 = vld [vmem:[%s6461_s10] sm:$0xf] }
 0x495   : > { %2952 = vmatprep.subr.bf16.mxu1 %v4990_v48 }
 0x498   : > { %2953 = vmatpush1.bf16.msra.mxu1 %v4861_v51  ;;  %v4325_v51 = vpack.c.bf16 %v3132_v2, %v3131_v47  ;;  %v4887_v47 = vld [vmem:[%s6466_s15 + $0x20] sm:$0xff]   ;;  %v4888_v2 = vld [vmem:[%s6466_s15 + $0x28] sm:$0xff]  }
 0x499   : > { %2954 = vmatprep.subr.bf16.mxu1 %v4990_v48 }
 0x49c   : > { %2955 = vmatpush1.bf16.msra.mxu1 %v4862_v52  ;;  %v3133_v52 = vld [vmem:[%s6462_s11 + $0x10] sm:$0xff] }
 0x49d   : > { %2956 = vmatprep.subr.bf16.mxu1 %v4990_v48 }
 0x4a0   : > { %2957 = vmatpush1.bf16.msra.mxu1 %v4863_v53  ;;  %v3134_v53 = vld [vmem:[%s6462_s11 + $0x18] sm:$0xff] }
 0x4a1   : > { %2958 = vmatprep.subr.bf16.mxu1 %v4990_v48 }
 0x4a4   : > { %2959 = vmatpush1.bf16.msra.mxu1 %v4864_v54  ;;  %v4328_v54 = vpack.c.bf16 %v3134_v53, %v3133_v52 }
 0x4a5   : > { %2960 = vmatprep.subr.bf16.mxu1 %v4990_v48 }
 0x4a8   : > { %2961 = vmatpush1.bf16.msra.mxu1 %v4865_v55  ;;  %v3135_v55 = vld [vmem:[%s6462_s11 + $0x20] sm:$0xff] }
 0x4a9   : > { %2962 = vmatprep.subr.bf16.mxu1 %v4990_v48  ;;  %v3218_v48 = vld [vmem:[%s6463_s12 + $0x8] sm:$0xff] }
 0x4aa   : > { %v4349_v7 = vpack.c.bf16 %v3218_v48, %v3217_v4  ;;  %v3137_v4 = vld [vmem:[%s6462_s11 + $0x30] sm:$0xff]  ;;  %v3138_v48 = vld [vmem:[%s6462_s11 + $0x38] sm:$0xff] }
 0x4ac   : > { %2963 = vmatpush1.bf16.msra.mxu1 %v4866_v56  ;;  %v3136_v56 = vld [vmem:[%s6462_s11 + $0x28] sm:$0xff] }
 0x4ad   : > { %4348 = vmatprep.subr.bf16.mxu1 %v4992_v40 }
 0x4af   : > { %2975 = vmatmul.mubr.bf16.vlgmr.msra.gmra.mrb[28].mxu1 %v2170_v63  ;;  %v4331_v63 = vpack.c.bf16 %v3136_v56, %v3135_v55 }
 0x4b0   : > { %4223 = vmatprep.mubr.msk.f32.mxu1 %vm5011_vm2, %v4991_v12  ;;  %4350 = vmatpush3.bf16.msra.mxu1 %v4349_v7  ;;  %v4334_v7 = vpack.c.bf16 %v3138_v48, %v3137_v4  ;;  %v4890_v4 = vld [vmem:[%s6466_s15 + $0x38] ss:$0 sps:$4 sm:$0xff]  }
 0x4b1   : > { %4351 = vmatprep.subr.bf16.mxu1 %v4992_v40  ;;  %v3556_v48 = vsel %vm1474_vm15, %v4890_v4, 0 }
 0x4b4   : > { %4353 = vmatpush3.bf16.msra.mxu1 %v4352_v59  ;;  %v4337_v59 = vpack.c.bf16 %v3140_v58, %v3139_v57  ;;  %v4892_v57 = vld [vmem:[%s6468_s17 + $0x8] sm:$0xff]   ;;  %v4893_v58 = vld [vmem:[%s6468_s17 + $0x10] sm:$0xff]  }
 0x4b5   : > { %4354 = vmatprep.subr.bf16.mxu1 %v4992_v40 }
 0x4b8   : > { %4356 = vmatpush3.bf16.msra.mxu1 %v4355_v5  ;;  %v4340_v5 = vpack.c.bf16 %v3142_v61, %v3141_v60  ;;  %v3352_v61 = vld [vmem:[%s6465_s14] sm:$0x1] }
 0x4b9   : > { %4357 = vmatprep.subr.bf16.mxu1 %v4992_v40 }
 0x4bc   : > { %4359 = vmatpush3.bf16.msra.mxu1 %v4358_v9 }
 0x4bd   : > { %4360 = vmatprep.subr.bf16.mxu1 %v4992_v40 }
 0x4c0   : > { %4362 = vmatpush3.bf16.msra.mxu1 %v4361_v13 }
 0x4c1   : > { %4363 = vmatprep.subr.bf16.mxu1 %v4992_v40 }
 0x4c4   : > { %4365 = vmatpush3.bf16.msra.mxu1 %v4364_v17  ;;  %v4867_v17 = vld [vmem:[%s6464_s13 + $0x40] sm:$0xff]  }
 0x4c5   : > { %4366 = vmatprep.subr.bf16.mxu1 %v4992_v40 }
 0x4c8   : > { %4368 = vmatpush3.bf16.msra.mxu1 %v4367_v21  ;;  %v4870_v21 = vld [vmem:[%s6464_s13 + $0x8] sm:$0xff]  }
 0x4c9   : > { %4369 = vmatprep.subr.bf16.mxu1 %v4992_v40 }
 0x516   : > { %v3998_v62 = vpop.f32.mrb[16].mxu1 }
 0x517   : > { %v3999_v6 = vpop.f32.mrb[17].mxu1 }
 0x518   : > { %v4000_v1 = vadd.f32 %v3999_v6, %v3998_v62  ;;  %v4001_v8 = vpop.f32.mrb[18].mxu1  ;;  %v3143_v62 = vld [vmem:[%s6462_s11 + $0x60] sm:$0xff]  ;;  %v3144_v6 = vld [vmem:[%s6462_s11 + $0x68] sm:$0xff] }
 0x519   : > { %v4002_v10 = vpop.f32.mrb[19].mxu1  ;;  %v4343_v37 = vpack.c.bf16 %v3144_v6, %v3143_v62  ;;  %v3231_v8 = vld [vmem:[%s6463_s12 + $0x70] sm:$0xff] }
 0x51a   : > { %v2817_v26 = vadd.f32 %v4000_v1, %v3867_v24  ;;  %v3146_v1 = vld [vmem:[%s6462_s11 + $0x78] sm:$0xff]  ;;  %v4871_v24 = vld [vmem:[%s6464_s13 + $0x50] sm:$0xff]  }
 0x51b   : > { %v4346_v9 = vpack.c.bf16 %v3146_v1, %v3145_v0  ;;  %v3232_v10 = vld [vmem:[%s6463_s12 + $0x78] sm:$0xff] }
 0x51c   : > { %v4370_v45 = vpack.c.bf16 %v3232_v10, %v3231_v8  ;;  %v4896_v10 = vld [vmem:[%s6468_s17 + $0x28] ss:$0 sps:$4 sm:$0x33]  }
 0x51e   : > { %4371 = vmatpush3.bf16.msra.mxu1 %v4370_v45  ;;  %v3651_v45 = vsel %vm3649_vm3, %v4896_v10, 0 }
 0x51f   : > { %4226 = vmatprep.subr.bf16.mxu1 %v4991_v12 }
 0x536   : > { %v4020_v23 = vpop.f32.mrb[20].mxu1 }
 0x537   : > { %v4021_v25 = vpop.f32.mrb[21].mxu1 }
 0x538   : > { %v4022_v14 = vadd.f32 %v4021_v25, %v4020_v23  ;;  %v4023_v27 = vpop.f32.mrb[22].mxu1  ;;  %v4872_v23 = vld [vmem:[%s6464_s13 + $0x10] sm:$0xff]   ;;  %v4873_v25 = vld [vmem:[%s6464_s13 + $0x58] sm:$0xff]  }
 0x539   : > { %v4024_v29 = vpop.f32.mrb[23].mxu1  ;;  %v4876_v27 = vld [vmem:[%s6464_s13 + $0x20] sm:$0xff]  }
 0x53a   : > { %v2857_v28 = vadd.f32 %v4022_v14, %v2817_v26  ;;  %v4874_v26 = vld [vmem:[%s6464_s13 + $0x18] sm:$0xff]   ;;  %v4875_v14 = vld [vmem:[%s6464_s13 + $0x60] sm:$0xff]   ;;  %v4877_v29 = vld [vmem:[%s6464_s13 + $0x68] sm:$0xff]  }
 0x53b   : > { %v4064_v30 = vpop.f32.mrb[8].mxu0 }
 0x53c   : > { %v4065_v32 = vpop.f32.mrb[9].mxu0 }
 0x53d   : > { %v4066_v33 = vadd.f32 %v4065_v32, %v4064_v30  ;;  %v4067_v34 = vpop.f32.mrb[10].mxu0  ;;  %v4879_v30 = vld [vmem:[%s6464_s13 + $0x70] sm:$0xff]  }
 0x53e   : > { %v4068_v31 = vpop.f32.mrb[11].mxu0  ;;  %v4880_v32 = vld [vmem:[%s6464_s13 + $0x30] sm:$0xff]   ;;  %v4882_v34 = vld [vmem:[%s6464_s13 + $0x38] sm:$0xff]  }
 0x556   : > { %v4042_v35 = vpop.f32.mrb[24].mxu1 }
 0x557   : > { %v4043_v36 = vpop.f32.mrb[25].mxu1 }
 0x558   : > { %v4044_v38 = vadd.f32 %v4043_v36, %v4042_v35  ;;  %v4045_v39 = vpop.f32.mrb[26].mxu1 }
 0x559   : > { %v4046_v41 = vpop.f32.mrb[27].mxu1 }
 0x55a   : > { %v2897_v42 = vadd.f32 %v4044_v38, %v2857_v28  ;;  %v4878_v28 = vld [vmem:[%s6464_s13 + $0x28] sm:$0xff]   ;;  %v4883_v41 = vld [vmem:[%s6466_s15] sm:$0xff]  }
 0x55c   : > { %v2937_v43 = vadd.f32 %v4066_v33, %v2897_v42  ;;  %v4881_v33 = vld [vmem:[%s6464_s13 + $0x78] sm:$0xff]  }
 0x582   : > { %v2976_v44 = vpop.f32.mrb[28].mxu1 }
 0x583   : > { %v2977_v46 = vadd.f32 %v2976_v44, %v2937_v43  ;;  %v2978_v22 = vpop.f32.mrb[29].mxu1  ;;  %v4884_v43 = vld [vmem:[%s6466_s15 + $0x8] sm:$0xff]  }
 0x584   : > { %v2979_v19 = vpop.f32.mrb[30].mxu1 }
 0x585   : > { %v2980_v49 = vpop.f32.mrb[31].mxu1  ;;  %4147 = vmatpush3.msra.mxu0 %v2977_v46  ;;  %v4886_v19 = vld [vmem:[%s6466_s15 + $0x18] sm:$0xff]  }
 0x586   : > { %4149 = vmatmul.mubr.msk.f32.vlgmr.msra.gmra.mrb[12].mxu0 %vm808_vm13, %v2982_v3  ;;  %4151 = vmatprep.subr.mxu0 %v4991_v12  ;;  %v4885_v3 = vld [vmem:[%s6466_s15 + $0x10] sm:$0xff]  }
 0x587   : > { %4152 = vmatpush3.msra.mxu0 %v2977_v46  ;;  %4153 = vmatprep.mubr.msk.f32.mxu0 %vm5011_vm2, %v4991_v12 }
 0x588   : > { %4324 = vmatprep.subr.bf16.mxu0 %v4992_v40 }
 0x58a   : > { %4154 = vmatmul.mubr.msk.f32.vlgmr.msra.gmra.mrb[14].mxu0 %vm808_vm13, %v3056_v50 }
 0x58b   : > { %4326 = vmatpush3.bf16.msra.mxu0 %v4325_v51  ;;  %4188 = vmatprep.mubr.msk.f32.mxu0 %vm5011_vm2, %v4991_v12 }
 0x58c   : > { %4327 = vmatprep.subr.bf16.mxu0 %v4992_v40 }
 0x58f   : > { %4329 = vmatpush3.bf16.msra.mxu0 %v4328_v54 }
 0x590   : > { %4330 = vmatprep.subr.bf16.mxu0 %v4992_v40 }
 0x593   : > { %4332 = vmatpush3.bf16.msra.mxu0 %v4331_v63  ;;  %v4889_v63 = vld [vmem:[%s6466_s15 + $0x30] sm:$0xff]  }
 0x594   : > { %4333 = vmatprep.subr.bf16.mxu0 %v4992_v40 }
 0x597   : > { %4335 = vmatpush3.bf16.msra.mxu0 %v4334_v7  ;;  %v4891_v7 = vld [vmem:[%s6468_s17] sm:$0xff]  }
 0x598   : > { %4336 = vmatprep.subr.bf16.mxu0 %v4992_v40 }
 0x59b   : > { %4338 = vmatpush3.bf16.msra.mxu0 %v4337_v59  ;;  %v4894_v59 = vld [vmem:[%s6468_s17 + $0x18] sm:$0xff]  }
 0x59c   : > { %4339 = vmatprep.subr.bf16.mxu0 %v4992_v40 }
 0x59f   : > { %4341 = vmatpush3.bf16.msra.mxu0 %v4340_v5 }
 0x5a0   : > { %4342 = vmatprep.subr.bf16.mxu0 %v4992_v40 }
 0x5a3   : > { %4344 = vmatpush3.bf16.msra.mxu0 %v4343_v37 }
 0x5a4   : > { %4345 = vmatprep.subr.bf16.mxu0 %v4992_v40 }
 0x5a7   : > { %4347 = vmatpush3.bf16.msra.mxu0 %v4346_v9  ;;  %v4895_v9 = vld [vmem:[%s6468_s17 + $0x20] sm:$0xff]  }
 0x5a8   : > { %4108 = vmatprep.subr.bf16.mxu0 %v4867_v17 }
 0x659   : > { %v3052_v40 = vpop.f32.mrb[12].mxu0 }
 0x65a   : > { %v4150_v11 = vpop.f32.mrb[13].mxu0 }
 0x65d   : > { %v3126_v13 = vpop.f32.mrb[14].mxu0 }
 0x65e   : > { %v3130_v15 = vmax.f32 %v3052_v40, %v3126_v13  ;;  %v4155_v16 = vpop.f32.mrb[15].mxu0  ;;  %v3506_v40 = vld [vmem:[%s6467_s16] sm:$0x1] }
 0x660   : > { %4189 = vmatmul.mubr.f32.vlgmr.msra.gmra.mrb[16].mxu0 %v3130_v15  ;;  %4224 = vmatmul.mubr.f32.vlgmr.msra.gmra.mrb[32].mxu1 %v3130_v15 }
 0x661   : > { %4242 = vmatprep.mubr.msk.bf16.mxu1 %vm5011_vm2, %v4991_v12  ;;  %4109 = vmatpush3.bf16.msra.mxu0 %v4868_v18 }
 0x662   : > { %4110 = vmatprep.subr.bf16.mxu0 %v4869_v20  ;;  %4227 = vmatpush3.bf16.msra.mxu1 %v4883_v41 }
 0x663   : > { %4228 = vmatprep.subr.bf16.mxu1 %v4991_v12 }
 0x665   : > { %4111 = vmatpush3.bf16.msra.mxu0 %v4870_v21 }
 0x666   : > { %4112 = vmatprep.subr.bf16.mxu0 %v4871_v24  ;;  %4229 = vmatpush3.bf16.msra.mxu1 %v4884_v43 }
 0x667   : > { %4230 = vmatprep.subr.bf16.mxu1 %v4991_v12 }
 0x669   : > { %4113 = vmatpush3.bf16.msra.mxu0 %v4872_v23 }
 0x66a   : > { %4114 = vmatprep.subr.bf16.mxu0 %v4873_v25  ;;  %4231 = vmatpush3.bf16.msra.mxu1 %v4885_v3 }
 0x66b   : > { %4232 = vmatprep.subr.bf16.mxu1 %v4991_v12 }
 0x66d   : > { %4115 = vmatpush3.bf16.msra.mxu0 %v4874_v26 }
 0x66e   : > { %4116 = vmatprep.subr.bf16.mxu0 %v4875_v14  ;;  %4233 = vmatpush3.bf16.msra.mxu1 %v4886_v19 }
 0x66f   : > { %4234 = vmatprep.subr.bf16.mxu1 %v4991_v12 }
 0x671   : > { %4117 = vmatpush3.bf16.msra.mxu0 %v4876_v27 }
 0x672   : > { %4118 = vmatprep.subr.bf16.mxu0 %v4877_v29  ;;  %4235 = vmatpush3.bf16.msra.mxu1 %v4887_v47 }
 0x673   : > { %4236 = vmatprep.subr.bf16.mxu1 %v4991_v12 }
 0x675   : > { %4119 = vmatpush3.bf16.msra.mxu0 %v4878_v28 }
 0x676   : > { %4120 = vmatprep.subr.bf16.mxu0 %v4879_v30  ;;  %4237 = vmatpush3.bf16.msra.mxu1 %v4888_v2 }
 0x677   : > { %4238 = vmatprep.subr.bf16.mxu1 %v4991_v12 }
 0x679   : > { %4121 = vmatpush3.bf16.msra.mxu0 %v4880_v32 }
 0x67a   : > { %4122 = vmatprep.subr.bf16.mxu0 %v4881_v33  ;;  %4239 = vmatpush3.bf16.msra.mxu1 %v4889_v63 }
 0x67b   : > { %4240 = vmatprep.subr.bf16.mxu1 %v4991_v12 }
 0x67d   : > { %4123 = vmatpush3.bf16.msra.mxu0 %v4882_v34 }
 0x67e   : > { %4246 = vmatprep.subr.bf16.mxu0 %v4991_v12  ;;  %4241 = vmatpush3.bf16.msra.mxu1 %v3556_v48 }
 0x733   : > { %v3213_v31 = vpop.f32.mrb[16].mxu0  ;;  %v3299_v35 = vpop.f32.mrb[32].mxu1 }
 0x734   : > { %v3303_v36 = vmax.f32 %v3213_v31, %v3299_v35  ;;  %v4190_v38 = vpop.f32.mrb[17].mxu0  ;;  %v4225_v39 = vpop.f32.mrb[33].mxu1 }
 0x736   : > { %v3304_v42 = vmax.f32 %v3303_v36, 0.0 }
 0x738   : > { %v3306_v44 = vrot.slane %v3304_v42, 1  ;;  %v3312_v46 = vrot.slane %v3304_v42, 3  ;;  %v3310_v52 = vrot.slane %v3304_v42, 2 }
 0x73a   : > { %v4674_v22 = vpack.i.bf16 %v3306_v44, %v3312_v46 }
 0x73c   : > { %4675 = vrot.lane.b32.xlu1 %v4674_v22, %s5006_s27  ;;  %s594_s27 = scalar_lea.vmem [#allocation2], %s593_s2 }
 0x73d   : > { %s3719_s21 = sshll.u32 %s594_s27, 4  ;;  %s6410_s21 = int_to_ptr.vmem [resolvable:$true] %s3719_s21 }
 0x73e   : > { %s4902_s25 = scalar_lea.vmem %s6410_s21, 16  ;;  %p4909_p0 = scmp.lt.s32.totalorder %s6410_s21, %s4907_s19 }
 0x73f   : > { %p4903_p11 = scmp.ne.s32.totalorder %s6410_s21, %s4902_s25  ;;  %p4910_p1 = scmp.lt.s32.totalorder %s4908_s22, %s4902_s25 }
 0x741   : > { %p4904_p12 = pnand %p4903_p11, %p5151_p5  ;;  %p4911_p2 = por %p4910_p1, %p4909_p0 }
 0x743   : > { %p4905_p13 = pneg %p4904_p12 }
 0x745   : > { %p4912_p3 = pnand %p4911_p2, %p4905_p13 }
 0x7ae   : > { %v4676_v49 = vpop.permute.xlu1 %4675 }
 0x7af   : > { %v4678_v50 = vunpack.i.h.bf16 %v4676_v49  ;;  %v4677_v51 = vunpack.i.l.bf16 %v4676_v49 }
 0x7b1   : > { %v3316_v53 = vsel %vm796_vm6, %v3304_v42, %v4678_v50  ;;  %v3317_v54 = vsel %vm796_vm6, %v3310_v52, %v4677_v51  ;;  %vm3645_vm6 = vcmask 687104  }
 0x7b2   : > { %v3318_v55 = vpack.c.bf16 %v3316_v53, %v3316_v53  ;;  %v3319_v56 = vpack.c.bf16 %v3317_v54, %v3317_v54 }
 0x7b4   : > { %3481 = vmatprep.mubr.bf16.mxu0 %v3319_v56 }
 0x7b5   : > { %3482 = vmatmul.mubr.bf16.vlgmr.msra.gmra.mrb[20].mxu0 %v3318_v55 }
 0x7b6   : > { %4258 = vmatprep.mubr.msk.bf16.mxu0 %vm5011_vm2, %v4991_v12  ;;  %4247 = vmatpush3.bf16.msra.mxu0 %v4891_v7 }
 0x7b7   : > { %4248 = vmatprep.subr.bf16.mxu0 %v4991_v12 }
 0x7ba   : > { %4249 = vmatpush3.bf16.msra.mxu0 %v4892_v57 }
 0x7bb   : > { %4250 = vmatprep.subr.bf16.mxu0 %v4991_v12 }
 0x7be   : > { %4251 = vmatpush3.bf16.msra.mxu0 %v4893_v58 }
 0x7bf   : > { %4252 = vmatprep.subr.bf16.mxu0 %v4991_v12 }
 0x7c2   : > { %4253 = vmatpush3.bf16.msra.mxu0 %v4894_v59 }
 0x7c3   : > { %4254 = vmatprep.subr.bf16.mxu0 %v4991_v12 }
 0x7c6   : > { %4255 = vmatpush3.bf16.msra.mxu0 %v4895_v9 }
 0x7c7   : > { %4256 = vmatprep.subr.bf16.mxu0 %v4991_v12  ;;  %v3611_v12 = vld [vmem:[%s6469_s18] sm:$0x1] }
 0x7ca   : > { %4257 = vmatpush3.bf16.msra.mxu0 %v3651_v45 }
 0x888   : > { %v4124_v60 = vpop.f32.mrb[20].mxu0 }
 0x889   : > { %v4125_v5 = vpop.f32.mrb[21].mxu0 }
 0x88a   : > { %v4126_v62 = vadd.f32 %v4125_v5, %v4124_v60  ;;  %v4127_v6 = vpop.f32.mrb[22].mxu0 }
 0x88b   : > { %v4128_v37 = vpop.f32.mrb[23].mxu0 }
 0x88c   : > { %v3484_v0 = vadd.f32 %v4126_v62, %v3352_v61 }
 0x88e   : > { %v3489_v1 = vmax.f32 %v3484_v0, 0.0 }
 0x890   : > { %v3490_v8 = vpack.c.bf16 %v3489_v1, %v3489_v1 }
 0x892   : > { %4243 = vmatmul.mubr.msk.bf16.vlgmr.msra.gmra.mrb[36].mxu1 %vm784_vm12, %v3490_v8 }
 0x965   : > { %v3592_v11 = vpop.f32.mrb[36].mxu1 }
 0x966   : > { %v3593_v13 = vadd.f32 %v3592_v11, %v3506_v40  ;;  %v4244_v15 = vpop.f32.mrb[37].mxu1 }
 0x967   : > { %v3595_v16 = vpop.f32.mrb[38].mxu1 }
 0x968   : > { %v3598_v17 = vmax.f32 %v3593_v13, 0.0  ;;  %v4245_v18 = vpop.f32.mrb[39].mxu1 }
 0x96a   : > { %v3599_v20 = vpack.c.bf16 %v3598_v17, %v3598_v17 }
 0x96c   : > { %4259 = vmatmul.mubr.msk.bf16.vlgmr.msra.gmra.mrb[24].mxu0 %vm3645_vm6, %v3599_v20 }
 0xa3f   : > { %v3687_v21 = vpop.f32.mrb[24].mxu0 }
 0xa40   : > { %v3688_v24 = vadd.f32 %v3687_v21, %v3611_v12  ;;  %v4260_v23 = vpop.f32.mrb[25].mxu0 }
 0xa41   : > { %v3690_v25 = vpop.f32.mrb[26].mxu0 }
 0xa42   : > { %v4261_v26 = vpop.f32.mrb[27].mxu0  ;;  %v3694_v14 = vsel %vm3693_vm7, %v3688_v24, -inf }
 0xa43   : > { %3695 = vmax.xlane.f32.xlu0 %v3694_v14 }
 0xad0   : > { %v3696_v27 = vpop.xlane.xlu0 %3695 }
 0xad1   : > { %v3697_v29 = vsub.f32 %v3688_v24, %v3696_v27 }
 0xad3   : > { %v3698_v28 = vmul.f32 1.442695, %v3697_v29 }
 0xad5   : > { %4897 = vpow2.f32 %v3698_v28 }
 0xadf   : > { %v4898_v30 = vpop.eup %4897 }
 0xae0   : > { %v3700_v32 = vsel %vm3693_vm7, %v4898_v30, 0.0 }
 0xae1   : > { %3701 = vadd.xlane.f32.xlu1 %v3700_v32 }
 0xb6e   : > { %v3702_v33 = vpop.xlane.xlu1 %3701 }
 0xb6f   : > { %4899 = vrcp.f32 %v3702_v33 }
 0xb79   : > { %v4900_v34 = vpop.eup %4899 }
 0xb7a   : > { %v3704_v31 = vmul.f32 %v4900_v34, %v4898_v30 }
 0xb7c   : > { %3705 = vst.msk [vmem:[%s594_s27] sm:$0x1] %vm3693_vm7, %v3704_v31 }
 0xb7d   : > { %4915 = shalt.err (!%p4912_p3)
}
 0xb7e   : > { %s4916_s2 = scalar_lea.hbm %s6408_s28, 16  ;;  %s4920_s26 = scalar_lea.hbm %s6527_s23, 32 }
 0xb7f   : > { %p4917_p4 = scmp.ne.s32.totalorder %s6408_s28, %s4916_s2  ;;  %p4921_p9 = scmp.lt.u32.totalorder %s6408_s28, %s6527_s23 }
 0xb80   : > { %p4922_p10 = scmp.lt.u32.totalorder %s4920_s26, %s4916_s2  ;;  %p4924_p12 = scmp.lt.u32.totalorder %s4916_s2, %s6408_s28 }
 0xb81   : > { %p4918_p7 = pnand %p4917_p4, %p5151_p5 }
 0xb82   : > { %p4923_p11 = por %p4922_p10, %p4921_p9 }
 0xb83   : > { %p4919_p8 = pneg %p4918_p7 }
 0xb84   : > { %p4925_p13 = por %p4924_p12, %p4923_p11 }
 0xb86   : > { %p4926_p0 = pnand %p4925_p13, %p4919_p8 }
 0xb88   : > { %4929 = shalt.err (!%p4926_p0)
}
 0xb89   : > { %4394 = dma.vmem_to_hbm [thread:$0]  (%p5151_p5), %s6410_s21, 16, %s6408_s28, %s3707_s0  }
 0xb8a PF: > { %s6528_s25 = sld [smem:[#allocation7_spill]]  ;;  %s6529_s19 = sld [smem:[#allocation5_spill]] }
 0xb90   : > { %p4400_p1 = scmp.ge.s32.totalorder %s6528_s25, 2  ;;  %s3731_s20 = sand.u32 1, %s6529_s19  }
 0xb91   : > { %s3732_s27 = scalar_lea.sflag [#allocation3], %s3731_s20 }
 0xb92   : > { %p4397_p2 = pnand %p4400_p1, %p5155_p6 }
 0xb94   : > { %4947 = dma.done.wait (!%p4397_p2), %s3732_s27, 16  }
 0xb95   : > { %4949 = vsyncadd (!%p4397_p2), %s3732_s27, 4294967280  ;;  %s6531_s21 = sld [smem:[#allocation8_spill]]  ;;  %s6532_s2 = sld [smem:[#allocation6_spill]] }
 0xb96   : > { %s6533_s20 = sld [smem:[#allocation9_spill]]  ;;  %s6534_s0 = smov %s4956_s30 }
 0xb9b   : > { %p29_p3 = scmp.ge.s32.totalorder %s6531_s21, 4   ;;  %s6535_s30 = smov %s6532_s2 }
 0xb9d   :  { %31 = sbr.rel (!%p29_p3) target bundleno = 9 (0x9), region = 131 }
 0xba4   :  { %3736 = vsyncpa [#allocation3], 1 }
 0xba5   :  { %3738 = vsyncpa [#allocation3 + $0x1], 1 }

</bundles_post_ra>
